<compile_context>
chip_gen: v7x
topology: tpu7x:2x2x1
jax: 0.10.0
libtpu: 0.0.40
codegen_flags: <defaults>
</compile_context>

<pallas_src>
import jax
import jax.numpy as jnp
from jax.experimental import pallas as pl
from jax.experimental.pallas import tpu as pltpu

# ---- model / problem configuration (small, consistent with the module) ----
INPLANES = 16          # must be divisible by groups=16
GROUPS = 16
REDUCTION = 8
NUM_CLASSES = 10
H = W = 8              # input spatial
CIN = INPLANES
COUT = 2 * INPLANES    # 32 channels after preBlock
CRED = COUT // REDUCTION
HO = H - 2             # 3x3 valid conv output spatial
WO = W - 2
EPS = 1e-5
OUT_LANES = 128        # lane-dense (padded) classifier output width

# row indices inside the packed per-group weight table `cvec` (shape (30, 16))
IDX_K3A = 0            # rows 0..8  : 3x3 taps for even output channels
IDX_K3B = 9            # rows 9..17 : 3x3 taps for odd output channels
IDX_S3A, IDX_B3A, IDX_S3B, IDX_B3B = 18, 19, 20, 21       # folded BN1
IDX_W1AA, IDX_W1AB, IDX_W1BA, IDX_W1BB = 22, 23, 24, 25   # grouped 1x1 conv
IDX_S1A, IDX_B1A, IDX_S1B, IDX_B1B = 26, 27, 28, 29       # folded BN2


# ----------------------------- Pallas kernel --------------------------------
def aux_layer4_kernel(xpad_ref,            # (1, H+2, W+2, CIN)  -inf padded
                      cvec_ref,            # (30, GROUPS) packed per-group vecs
                      wse1_ref,            # (2, GROUPS, CRED)
                      wse2_ref,            # (2, CRED, GROUPS)
                      wfc_ref,             # (2, GROUPS, OUT_LANES) zero padded
                      bfc_ref,             # (1, OUT_LANES)         zero padded
                      out_ref):            # (1, 1, OUT_LANES)
    f32 = jnp.float32
    xp = xpad_ref[0]                       # (H+2, W+2, CIN)
    cv = cvec_ref[...]                     # (30, GROUPS)

    # ---- MaxPool2d(kernel=3, stride=1, padding=1, ceil_mode=True) ----
    mp = xp[0:H, 0:W, :]
    for dy in range(3):
        for dx in range(3):
            if dy == 0 and dx == 0:
                continue
            mp = jnp.maximum(mp, xp[dy:dy + H, dx:dx + W, :])

    # ---- grouped conv3x3 (groups=16 -> 1 input channel per group, 2 outputs
    #      per group).  Parity split: A = even output channels, B = odd.  Done
    #      on the VPU (weights are 94% zeros, MXU would be pure padding). ----
    accA = None
    accB = None
    for dy in range(3):
        for dx in range(3):
            k = dy * 3 + dx
            tap = mp[dy:dy + HO, dx:dx + WO, :]            # (HO, WO, GROUPS)
            ta = tap * cv[IDX_K3A + k]
            tb = tap * cv[IDX_K3B + k]
            accA = ta if accA is None else accA + ta
            accB = tb if accB is None else accB + tb

    # ---- BN1 + ReLU ----
    x1A = jnp.maximum(accA * cv[IDX_S3A] + cv[IDX_B3A], 0.0)
    x1B = jnp.maximum(accB * cv[IDX_S3B] + cv[IDX_B3B], 0.0)

    # ---- grouped conv1x1 (2 in / 2 out per group) + BN2 + ReLU ----
    zA = x1A * cv[IDX_W1AA] + x1B * cv[IDX_W1AB]
    zB = x1A * cv[IDX_W1BA] + x1B * cv[IDX_W1BB]
    x2A = jnp.maximum(zA * cv[IDX_S1A] + cv[IDX_B1A], 0.0)
    x2B = jnp.maximum(zB * cv[IDX_S1B] + cv[IDX_B1B], 0.0)

    # ---- global average pool (per channel) ----
    inv_hw = 1.0 / float(HO * WO)
    y0A = jnp.sum(jnp.sum(x2A, axis=0), axis=0, keepdims=True) * inv_hw  # (1,G)
    y0B = jnp.sum(jnp.sum(x2B, axis=0), axis=0, keepdims=True) * inv_hw  # (1,G)

    # ---- squeeze-excite ----
    hid = jnp.maximum(
        jnp.dot(y0A, wse1_ref[0], preferred_element_type=f32)
        + jnp.dot(y0B, wse1_ref[1], preferred_element_type=f32), 0.0)    # (1,CRED)
    gateA = jax.nn.sigmoid(
        jnp.dot(hid, wse2_ref[0], preferred_element_type=f32))           # (1,G)
    gateB = jax.nn.sigmoid(
        jnp.dot(hid, wse2_ref[1], preferred_element_type=f32))           # (1,G)

    # gate is spatially constant  =>  avg(x2 * gate) == y0 * gate
    pooledA = y0A * gateA
    pooledB = y0B * gateB

    # ---- final classifier (lane-dense, zero-padded to 128 lanes) ----
    out = (jnp.dot(pooledA, wfc_ref[0], preferred_element_type=f32)
           + jnp.dot(pooledB, wfc_ref[1], preferred_element_type=f32)
           + bfc_ref[...])                                               # (1,128)
    out_ref[0] = out


# ------------------------------- wrapper -------------------------------------
def aux_layer4_forward(x_nchw, kparams):
    cvec, wse1, wse2, wfc, bfc = kparams
    B = x_nchw.shape[0]
    x = jnp.transpose(x_nchw, (0, 2, 3, 1)).astype(jnp.float32)     # NHWC
    xpad = jnp.pad(x, ((0, 0), (1, 1), (1, 1), (0, 0)),
                   mode="constant", constant_values=-jnp.inf)

    def full_spec(a):
        nd = a.ndim
        return pl.BlockSpec(a.shape, lambda b, _n=nd: (0,) * _n)

    out = pl.pallas_call(
        aux_layer4_kernel,
        out_shape=jax.ShapeDtypeStruct((B, 1, OUT_LANES), jnp.float32),
        grid_spec=pltpu.PrefetchScalarGridSpec(
            num_scalar_prefetch=0,
            grid=(B,),
            in_specs=[
                pl.BlockSpec((1, H + 2, W + 2, CIN), lambda b: (b, 0, 0, 0)),
                full_spec(cvec), full_spec(wse1), full_spec(wse2),
                full_spec(wfc), full_spec(bfc),
            ],
            out_specs=pl.BlockSpec((1, 1, OUT_LANES), lambda b: (b, 0, 0)),
        ),
        compiler_params=pltpu.CompilerParams(
            dimension_semantics=("parallel",)),
    )(xpad, cvec, wse1, wse2, wfc, bfc)
    return out[:, 0, :NUM_CLASSES]


# --------------------- parameter init (deterministic) ------------------------
def init_raw_params(key):
    ks = jax.random.split(key, 16)
    w_c1 = 0.1 * jax.random.normal(ks[0], (COUT, CIN // GROUPS, 3, 3), jnp.float32)
    b_c1 = 0.1 * jax.random.normal(ks[1], (COUT,), jnp.float32)
    w_c2 = 0.1 * jax.random.normal(ks[2], (COUT, COUT // GROUPS, 1, 1), jnp.float32)
    b_c2 = 0.1 * jax.random.normal(ks[3], (COUT,), jnp.float32)
    g1 = 1.0 + 0.1 * jax.random.normal(ks[4], (COUT,), jnp.float32)
    be1 = 0.1 * jax.random.normal(ks[5], (COUT,), jnp.float32)
    rm1 = 0.1 * jax.random.normal(ks[6], (COUT,), jnp.float32)
    rv1 = 1.0 + 0.5 * jax.random.uniform(ks[7], (COUT,), jnp.float32)
    g2 = 1.0 + 0.1 * jax.random.normal(ks[8], (COUT,), jnp.float32)
    be2 = 0.1 * jax.random.normal(ks[9], (COUT,), jnp.float32)
    rm2 = 0.1 * jax.random.normal(ks[10], (COUT,), jnp.float32)
    rv2 = 1.0 + 0.5 * jax.random.uniform(ks[11], (COUT,), jnp.float32)
    w_se1 = 0.2 * jax.random.normal(ks[12], (CRED, COUT), jnp.float32)
    w_se2 = 0.2 * jax.random.normal(ks[13], (COUT, CRED), jnp.float32)
    w_fc = 0.1 * jax.random.normal(ks[14], (NUM_CLASSES, COUT), jnp.float32)
    b_fc = 0.1 * jax.random.normal(ks[15], (NUM_CLASSES,), jnp.float32)
    return (w_c1, b_c1, g1, be1, rm1, rv1,
            w_c2, b_c2, g2, be2, rm2, rv2,
            w_se1, w_se2, w_fc, b_fc)


def prepare_kernel_params(raw):
    (w_c1, b_c1, g1, be1, rm1, rv1,
     w_c2, b_c2, g2, be2, rm2, rv2,
     w_se1, w_se2, w_fc, b_fc) = raw

    # fold eval-mode BatchNorm (+ conv bias) into per-channel scale/shift
    s3 = g1 / jnp.sqrt(rv1 + EPS)
    b3 = be1 - rm1 * s3 + b_c1 * s3
    s1 = g2 / jnp.sqrt(rv2 + EPS)
    b1 = be2 - rm2 * s1 + b_c2 * s1

    # parity split: group g has output channels (2g, 2g+1); the 3x3 conv reads
    # input channel g, the 1x1 conv reads channels (2g, 2g+1).
    k3A = w_c1[0::2, 0].reshape(GROUPS, 9).T            # (9, GROUPS), k=dy*3+dx
    k3B = w_c1[1::2, 0].reshape(GROUPS, 9).T
    w1aa = w_c2[0::2, 0, 0, 0]
    w1ab = w_c2[0::2, 1, 0, 0]
    w1ba = w_c2[1::2, 0, 0, 0]
    w1bb = w_c2[1::2, 1, 0, 0]

    cvec = jnp.concatenate([
        k3A, k3B,
        s3[0::2][None], b3[0::2][None], s3[1::2][None], b3[1::2][None],
        w1aa[None], w1ab[None], w1ba[None], w1bb[None],
        s1[0::2][None], b1[0::2][None], s1[1::2][None], b1[1::2][None],
    ], axis=0).astype(jnp.float32)                      # (30, GROUPS)

    wm1 = w_se1.T                                       # (COUT, CRED)
    wse1 = jnp.stack([wm1[0::2], wm1[1::2]], axis=0)    # (2, GROUPS, CRED)
    wm2 = w_se2.T                                       # (CRED, COUT)
    wse2 = jnp.stack([wm2[:, 0::2], wm2[:, 1::2]], 0)   # (2, CRED, GROUPS)

    wfcm = w_fc.T                                       # (COUT, NUM_CLASSES)
    wfc = jnp.zeros((2, GROUPS, OUT_LANES), jnp.float32)
    wfc = wfc.at[0, :, :NUM_CLASSES].set(wfcm[0::2])
    wfc = wfc.at[1, :, :NUM_CLASSES].set(wfcm[1::2])
    bfc = jnp.zeros((1, OUT_LANES), jnp.float32).at[0, :NUM_CLASSES].set(b_fc)

    return (cvec, wse1, wse2, wfc, bfc)


# --------------------------- pure-JAX reference ------------------------------
def reference_forward(x_nchw, raw):
    (w_c1, b_c1, g1, be1, rm1, rv1,
     w_c2, b_c2, g2, be2, rm2, rv2,
     w_se1, w_se2, w_fc, b_fc) = raw
    x = x_nchw.astype(jnp.float32)
    xp = jnp.pad(x, ((0, 0), (0, 0), (1, 1), (1, 1)),
                 constant_values=-jnp.inf)
    mp = jnp.stack([xp[:, :, dy:dy + H, dx:dx + W]
                    for dy in range(3) for dx in range(3)], 0).max(0)
    dn = ('NCHW', 'OIHW', 'NCHW')
    c1 = jax.lax.conv_general_dilated(mp, w_c1, (1, 1), 'VALID',
                                      dimension_numbers=dn,
                                      feature_group_count=GROUPS)
    c1 = c1 + b_c1[None, :, None, None]
    c1 = ((c1 - rm1[None, :, None, None])
          / jnp.sqrt(rv1[None, :, None, None] + EPS)
          * g1[None, :, None, None] + be1[None, :, None, None])
    c1 = jnp.maximum(c1, 0.0)
    c2 = jax.lax.conv_general_dilated(c1, w_c2, (1, 1), 'VALID',
                                      dimension_numbers=dn,
                                      feature_group_count=GROUPS)
    c2 = c2 + b_c2[None, :, None, None]
    c2 = ((c2 - rm2[None, :, None, None])
          / jnp.sqrt(rv2[None, :, None, None] + EPS)
          * g2[None, :, None, None] + be2[None, :, None, None])
    x2 = jnp.maximum(c2, 0.0)
    y0 = x2.mean(axis=(2, 3))                                  # (B, COUT)
    hid = jnp.maximum(y0 @ w_se1.T, 0.0)
    gate = jax.nn.sigmoid(hid @ w_se2.T)
    out = (x2 * gate[:, :, None, None]).mean(axis=(2, 3))
    return out @ w_fc.T + b_fc[None, :]


# ---------------------------------- main --------------------------------------
if __name__ == "__main__":
    key = jax.random.PRNGKey(0)
    kx, kp = jax.random.split(key)
    # PyTorch-convention NCHW input
    x = jax.random.normal(kx, (2, INPLANES, H, W), jnp.float32)

    raw = init_raw_params(kp)
    kparams = prepare_kernel_params(raw)

    out = aux_layer4_forward(x, kparams)
    out = jax.block_until_ready(out)

    ref = jax.block_until_ready(reference_forward(x, raw))

    assert out.shape == (2, NUM_CLASSES), out.shape
    assert bool(jnp.all(jnp.isfinite(out)))
    assert bool(jnp.allclose(out, ref, rtol=5e-2, atol=5e-2)), (out, ref)

    print("KERNEL_OK")
</pallas_src>

<mosaic_0001>
module attributes {stable_mosaic.version = 11 : i64} {
  func.func @aux_layer4_kernel(%arg0: i32, %arg1: memref<1x10x10x16xf32, #tpu.memory_space<vmem>>, %arg2: memref<30x16xf32, #tpu.memory_space<vmem>>, %arg3: memref<2x16x4xf32, #tpu.memory_space<vmem>>, %arg4: memref<2x4x16xf32, #tpu.memory_space<vmem>>, %arg5: memref<2x16x128xf32, #tpu.memory_space<vmem>>, %arg6: memref<1x128xf32, #tpu.memory_space<vmem>>, %arg7: memref<1x1x128xf32, #tpu.memory_space<vmem>>) attributes {dimension_semantics = [#tpu.dimension_semantics<parallel>], iteration_bounds = array<i64: 2>, scalar_prefetch = 0 : i64, scratch_operands = 0 : i64, tpu.core_type = #tpu.core_type<tc>, window_params = [{transform_indices = @transform_0, window_bounds = array<i64: 1, 10, 10, 16>}, {pipeline_mode = #tpu.pipeline_mode<synchronous>, transform_indices = @transform_1, window_bounds = array<i64: 30, 16>}, {pipeline_mode = #tpu.pipeline_mode<synchronous>, transform_indices = @transform_2, window_bounds = array<i64: 2, 16, 4>}, {pipeline_mode = #tpu.pipeline_mode<synchronous>, transform_indices = @transform_3, window_bounds = array<i64: 2, 4, 16>}, {pipeline_mode = #tpu.pipeline_mode<synchronous>, transform_indices = @transform_4, window_bounds = array<i64: 2, 16, 128>}, {pipeline_mode = #tpu.pipeline_mode<synchronous>, transform_indices = @transform_5, window_bounds = array<i64: 1, 128>}, {transform_indices = @transform_6, window_bounds = array<i64: 1, 1, 128>}]} {
    %c0 = arith.constant 0 : index
    %c0_0 = arith.constant 0 : index
    %c0_1 = arith.constant 0 : index
    %c0_2 = arith.constant 0 : index
    %0 = vector.load %arg1[%c0, %c0_0, %c0_1, %c0_2] : memref<1x10x10x16xf32, #tpu.memory_space<vmem>>, vector<1x10x10x16xf32>
    %1 = vector.shape_cast %0 : vector<1x10x10x16xf32> to vector<10x10x16xf32>
    %c0_3 = arith.constant 0 : index
    %c0_4 = arith.constant 0 : index
    %2 = vector.load %arg2[%c0_3, %c0_4] : memref<30x16xf32, #tpu.memory_space<vmem>>, vector<30x16xf32>
    %3 = vector.extract_strided_slice %1 {offsets = [0, 0, 0], sizes = [8, 8, 16], strides = [1, 1, 1]} : vector<10x10x16xf32> to vector<8x8x16xf32>
    %4 = vector.extract_strided_slice %1 {offsets = [0, 1, 0], sizes = [8, 8, 16], strides = [1, 1, 1]} : vector<10x10x16xf32> to vector<8x8x16xf32>
    %5 = arith.maximumf %3, %4 : vector<8x8x16xf32>
    %6 = vector.extract_strided_slice %1 {offsets = [0, 2, 0], sizes = [8, 8, 16], strides = [1, 1, 1]} : vector<10x10x16xf32> to vector<8x8x16xf32>
    %7 = arith.maximumf %5, %6 : vector<8x8x16xf32>
    %8 = vector.extract_strided_slice %1 {offsets = [1, 0, 0], sizes = [8, 8, 16], strides = [1, 1, 1]} : vector<10x10x16xf32> to vector<8x8x16xf32>
    %9 = arith.maximumf %7, %8 : vector<8x8x16xf32>
    %10 = vector.extract_strided_slice %1 {offsets = [1, 1, 0], sizes = [8, 8, 16], strides = [1, 1, 1]} : vector<10x10x16xf32> to vector<8x8x16xf32>
    %11 = arith.maximumf %9, %10 : vector<8x8x16xf32>
    %12 = vector.extract_strided_slice %1 {offsets = [1, 2, 0], sizes = [8, 8, 16], strides = [1, 1, 1]} : vector<10x10x16xf32> to vector<8x8x16xf32>
    %13 = arith.maximumf %11, %12 : vector<8x8x16xf32>
    %14 = vector.extract_strided_slice %1 {offsets = [2, 0, 0], sizes = [8, 8, 16], strides = [1, 1, 1]} : vector<10x10x16xf32> to vector<8x8x16xf32>
    %15 = arith.maximumf %13, %14 : vector<8x8x16xf32>
    %16 = vector.extract_strided_slice %1 {offsets = [2, 1, 0], sizes = [8, 8, 16], strides = [1, 1, 1]} : vector<10x10x16xf32> to vector<8x8x16xf32>
    %17 = arith.maximumf %15, %16 : vector<8x8x16xf32>
    %18 = vector.extract_strided_slice %1 {offsets = [2, 2, 0], sizes = [8, 8, 16], strides = [1, 1, 1]} : vector<10x10x16xf32> to vector<8x8x16xf32>
    %19 = arith.maximumf %17, %18 : vector<8x8x16xf32>
    %20 = vector.extract_strided_slice %19 {offsets = [0, 0, 0], sizes = [6, 6, 16], strides = [1, 1, 1]} : vector<8x8x16xf32> to vector<6x6x16xf32>
    %21 = vector.extract_strided_slice %2 {offsets = [0, 0], sizes = [1, 16], strides = [1, 1]} : vector<30x16xf32> to vector<1x16xf32>
    %22 = vector.shape_cast %21 : vector<1x16xf32> to vector<16xf32>
    %23 = vector.shape_cast %22 : vector<16xf32> to vector<1x1x16xf32>
    %24 = vector.broadcast %23 : vector<1x1x16xf32> to vector<6x6x16xf32>
    %25 = arith.mulf %20, %24 : vector<6x6x16xf32>
    %26 = vector.extract_strided_slice %2 {offsets = [9, 0], sizes = [1, 16], strides = [1, 1]} : vector<30x16xf32> to vector<1x16xf32>
    %27 = vector.shape_cast %26 : vector<1x16xf32> to vector<16xf32>
    %28 = vector.shape_cast %27 : vector<16xf32> to vector<1x1x16xf32>
    %29 = vector.broadcast %28 : vector<1x1x16xf32> to vector<6x6x16xf32>
    %30 = arith.mulf %20, %29 : vector<6x6x16xf32>
    %31 = vector.extract_strided_slice %19 {offsets = [0, 1, 0], sizes = [6, 6, 16], strides = [1, 1, 1]} : vector<8x8x16xf32> to vector<6x6x16xf32>
    %32 = vector.extract_strided_slice %2 {offsets = [1, 0], sizes = [1, 16], strides = [1, 1]} : vector<30x16xf32> to vector<1x16xf32>
    %33 = vector.shape_cast %32 : vector<1x16xf32> to vector<16xf32>
    %34 = vector.shape_cast %33 : vector<16xf32> to vector<1x1x16xf32>
    %35 = vector.broadcast %34 : vector<1x1x16xf32> to vector<6x6x16xf32>
    %36 = arith.mulf %31, %35 : vector<6x6x16xf32>
    %37 = vector.extract_strided_slice %2 {offsets = [10, 0], sizes = [1, 16], strides = [1, 1]} : vector<30x16xf32> to vector<1x16xf32>
    %38 = vector.shape_cast %37 : vector<1x16xf32> to vector<16xf32>
    %39 = vector.shape_cast %38 : vector<16xf32> to vector<1x1x16xf32>
    %40 = vector.broadcast %39 : vector<1x1x16xf32> to vector<6x6x16xf32>
    %41 = arith.mulf %31, %40 : vector<6x6x16xf32>
    %42 = arith.addf %25, %36 : vector<6x6x16xf32>
    %43 = arith.addf %30, %41 : vector<6x6x16xf32>
    %44 = vector.extract_strided_slice %19 {offsets = [0, 2, 0], sizes = [6, 6, 16], strides = [1, 1, 1]} : vector<8x8x16xf32> to vector<6x6x16xf32>
    %45 = vector.extract_strided_slice %2 {offsets = [2, 0], sizes = [1, 16], strides = [1, 1]} : vector<30x16xf32> to vector<1x16xf32>
    %46 = vector.shape_cast %45 : vector<1x16xf32> to vector<16xf32>
    %47 = vector.shape_cast %46 : vector<16xf32> to vector<1x1x16xf32>
    %48 = vector.broadcast %47 : vector<1x1x16xf32> to vector<6x6x16xf32>
    %49 = arith.mulf %44, %48 : vector<6x6x16xf32>
    %50 = vector.extract_strided_slice %2 {offsets = [11, 0], sizes = [1, 16], strides = [1, 1]} : vector<30x16xf32> to vector<1x16xf32>
    %51 = vector.shape_cast %50 : vector<1x16xf32> to vector<16xf32>
    %52 = vector.shape_cast %51 : vector<16xf32> to vector<1x1x16xf32>
    %53 = vector.broadcast %52 : vector<1x1x16xf32> to vector<6x6x16xf32>
    %54 = arith.mulf %44, %53 : vector<6x6x16xf32>
    %55 = arith.addf %42, %49 : vector<6x6x16xf32>
    %56 = arith.addf %43, %54 : vector<6x6x16xf32>
    %57 = vector.extract_strided_slice %19 {offsets = [1, 0, 0], sizes = [6, 6, 16], strides = [1, 1, 1]} : vector<8x8x16xf32> to vector<6x6x16xf32>
    %58 = vector.extract_strided_slice %2 {offsets = [3, 0], sizes = [1, 16], strides = [1, 1]} : vector<30x16xf32> to vector<1x16xf32>
    %59 = vector.shape_cast %58 : vector<1x16xf32> to vector<16xf32>
    %60 = vector.shape_cast %59 : vector<16xf32> to vector<1x1x16xf32>
    %61 = vector.broadcast %60 : vector<1x1x16xf32> to vector<6x6x16xf32>
    %62 = arith.mulf %57, %61 : vector<6x6x16xf32>
    %63 = vector.extract_strided_slice %2 {offsets = [12, 0], sizes = [1, 16], strides = [1, 1]} : vector<30x16xf32> to vector<1x16xf32>
    %64 = vector.shape_cast %63 : vector<1x16xf32> to vector<16xf32>
    %65 = vector.shape_cast %64 : vector<16xf32> to vector<1x1x16xf32>
    %66 = vector.broadcast %65 : vector<1x1x16xf32> to vector<6x6x16xf32>
    %67 = arith.mulf %57, %66 : vector<6x6x16xf32>
    %68 = arith.addf %55, %62 : vector<6x6x16xf32>
    %69 = arith.addf %56, %67 : vector<6x6x16xf32>
    %70 = vector.extract_strided_slice %19 {offsets = [1, 1, 0], sizes = [6, 6, 16], strides = [1, 1, 1]} : vector<8x8x16xf32> to vector<6x6x16xf32>
    %71 = vector.extract_strided_slice %2 {offsets = [4, 0], sizes = [1, 16], strides = [1, 1]} : vector<30x16xf32> to vector<1x16xf32>
    %72 = vector.shape_cast %71 : vector<1x16xf32> to vector<16xf32>
    %73 = vector.shape_cast %72 : vector<16xf32> to vector<1x1x16xf32>
    %74 = vector.broadcast %73 : vector<1x1x16xf32> to vector<6x6x16xf32>
    %75 = arith.mulf %70, %74 : vector<6x6x16xf32>
    %76 = vector.extract_strided_slice %2 {offsets = [13, 0], sizes = [1, 16], strides = [1, 1]} : vector<30x16xf32> to vector<1x16xf32>
    %77 = vector.shape_cast %76 : vector<1x16xf32> to vector<16xf32>
    %78 = vector.shape_cast %77 : vector<16xf32> to vector<1x1x16xf32>
    %79 = vector.broadcast %78 : vector<1x1x16xf32> to vector<6x6x16xf32>
    %80 = arith.mulf %70, %79 : vector<6x6x16xf32>
    %81 = arith.addf %68, %75 : vector<6x6x16xf32>
    %82 = arith.addf %69, %80 : vector<6x6x16xf32>
    %83 = vector.extract_strided_slice %19 {offsets = [1, 2, 0], sizes = [6, 6, 16], strides = [1, 1, 1]} : vector<8x8x16xf32> to vector<6x6x16xf32>
    %84 = vector.extract_strided_slice %2 {offsets = [5, 0], sizes = [1, 16], strides = [1, 1]} : vector<30x16xf32> to vector<1x16xf32>
    %85 = vector.shape_cast %84 : vector<1x16xf32> to vector<16xf32>
    %86 = vector.shape_cast %85 : vector<16xf32> to vector<1x1x16xf32>
    %87 = vector.broadcast %86 : vector<1x1x16xf32> to vector<6x6x16xf32>
    %88 = arith.mulf %83, %87 : vector<6x6x16xf32>
    %89 = vector.extract_strided_slice %2 {offsets = [14, 0], sizes = [1, 16], strides = [1, 1]} : vector<30x16xf32> to vector<1x16xf32>
    %90 = vector.shape_cast %89 : vector<1x16xf32> to vector<16xf32>
    %91 = vector.shape_cast %90 : vector<16xf32> to vector<1x1x16xf32>
    %92 = vector.broadcast %91 : vector<1x1x16xf32> to vector<6x6x16xf32>
    %93 = arith.mulf %83, %92 : vector<6x6x16xf32>
    %94 = arith.addf %81, %88 : vector<6x6x16xf32>
    %95 = arith.addf %82, %93 : vector<6x6x16xf32>
    %96 = vector.extract_strided_slice %19 {offsets = [2, 0, 0], sizes = [6, 6, 16], strides = [1, 1, 1]} : vector<8x8x16xf32> to vector<6x6x16xf32>
    %97 = vector.extract_strided_slice %2 {offsets = [6, 0], sizes = [1, 16], strides = [1, 1]} : vector<30x16xf32> to vector<1x16xf32>
    %98 = vector.shape_cast %97 : vector<1x16xf32> to vector<16xf32>
    %99 = vector.shape_cast %98 : vector<16xf32> to vector<1x1x16xf32>
    %100 = vector.broadcast %99 : vector<1x1x16xf32> to vector<6x6x16xf32>
    %101 = arith.mulf %96, %100 : vector<6x6x16xf32>
    %102 = vector.extract_strided_slice %2 {offsets = [15, 0], sizes = [1, 16], strides = [1, 1]} : vector<30x16xf32> to vector<1x16xf32>
    %103 = vector.shape_cast %102 : vector<1x16xf32> to vector<16xf32>
    %104 = vector.shape_cast %103 : vector<16xf32> to vector<1x1x16xf32>
    %105 = vector.broadcast %104 : vector<1x1x16xf32> to vector<6x6x16xf32>
    %106 = arith.mulf %96, %105 : vector<6x6x16xf32>
    %107 = arith.addf %94, %101 : vector<6x6x16xf32>
    %108 = arith.addf %95, %106 : vector<6x6x16xf32>
    %109 = vector.extract_strided_slice %19 {offsets = [2, 1, 0], sizes = [6, 6, 16], strides = [1, 1, 1]} : vector<8x8x16xf32> to vector<6x6x16xf32>
    %110 = vector.extract_strided_slice %2 {offsets = [7, 0], sizes = [1, 16], strides = [1, 1]} : vector<30x16xf32> to vector<1x16xf32>
    %111 = vector.shape_cast %110 : vector<1x16xf32> to vector<16xf32>
    %112 = vector.shape_cast %111 : vector<16xf32> to vector<1x1x16xf32>
    %113 = vector.broadcast %112 : vector<1x1x16xf32> to vector<6x6x16xf32>
    %114 = arith.mulf %109, %113 : vector<6x6x16xf32>
    %115 = vector.extract_strided_slice %2 {offsets = [16, 0], sizes = [1, 16], strides = [1, 1]} : vector<30x16xf32> to vector<1x16xf32>
    %116 = vector.shape_cast %115 : vector<1x16xf32> to vector<16xf32>
    %117 = vector.shape_cast %116 : vector<16xf32> to vector<1x1x16xf32>
    %118 = vector.broadcast %117 : vector<1x1x16xf32> to vector<6x6x16xf32>
    %119 = arith.mulf %109, %118 : vector<6x6x16xf32>
    %120 = arith.addf %107, %114 : vector<6x6x16xf32>
    %121 = arith.addf %108, %119 : vector<6x6x16xf32>
    %122 = vector.extract_strided_slice %19 {offsets = [2, 2, 0], sizes = [6, 6, 16], strides = [1, 1, 1]} : vector<8x8x16xf32> to vector<6x6x16xf32>
    %123 = vector.extract_strided_slice %2 {offsets = [8, 0], sizes = [1, 16], strides = [1, 1]} : vector<30x16xf32> to vector<1x16xf32>
    %124 = vector.shape_cast %123 : vector<1x16xf32> to vector<16xf32>
    %125 = vector.shape_cast %124 : vector<16xf32> to vector<1x1x16xf32>
    %126 = vector.broadcast %125 : vector<1x1x16xf32> to vector<6x6x16xf32>
    %127 = arith.mulf %122, %126 : vector<6x6x16xf32>
    %128 = vector.extract_strided_slice %2 {offsets = [17, 0], sizes = [1, 16], strides = [1, 1]} : vector<30x16xf32> to vector<1x16xf32>
    %129 = vector.shape_cast %128 : vector<1x16xf32> to vector<16xf32>
    %130 = vector.shape_cast %129 : vector<16xf32> to vector<1x1x16xf32>
    %131 = vector.broadcast %130 : vector<1x1x16xf32> to vector<6x6x16xf32>
    %132 = arith.mulf %122, %131 : vector<6x6x16xf32>
    %133 = arith.addf %120, %127 : vector<6x6x16xf32>
    %134 = arith.addf %121, %132 : vector<6x6x16xf32>
    %135 = vector.extract_strided_slice %2 {offsets = [18, 0], sizes = [1, 16], strides = [1, 1]} : vector<30x16xf32> to vector<1x16xf32>
    %136 = vector.shape_cast %135 : vector<1x16xf32> to vector<16xf32>
    %137 = vector.shape_cast %136 : vector<16xf32> to vector<1x1x16xf32>
    %138 = vector.broadcast %137 : vector<1x1x16xf32> to vector<6x6x16xf32>
    %139 = arith.mulf %133, %138 : vector<6x6x16xf32>
    %140 = vector.extract_strided_slice %2 {offsets = [19, 0], sizes = [1, 16], strides = [1, 1]} : vector<30x16xf32> to vector<1x16xf32>
    %141 = vector.shape_cast %140 : vector<1x16xf32> to vector<16xf32>
    %142 = vector.shape_cast %141 : vector<16xf32> to vector<1x1x16xf32>
    %143 = vector.broadcast %142 : vector<1x1x16xf32> to vector<6x6x16xf32>
    %144 = arith.addf %139, %143 : vector<6x6x16xf32>
    %cst = arith.constant 0.000000e+00 : f32
    %145 = vector.broadcast %cst : f32 to vector<6x6x16xf32>
    %146 = arith.maximumf %144, %145 : vector<6x6x16xf32>
    %147 = vector.extract_strided_slice %2 {offsets = [20, 0], sizes = [1, 16], strides = [1, 1]} : vector<30x16xf32> to vector<1x16xf32>
    %148 = vector.shape_cast %147 : vector<1x16xf32> to vector<16xf32>
    %149 = vector.shape_cast %148 : vector<16xf32> to vector<1x1x16xf32>
    %150 = vector.broadcast %149 : vector<1x1x16xf32> to vector<6x6x16xf32>
    %151 = arith.mulf %134, %150 : vector<6x6x16xf32>
    %152 = vector.extract_strided_slice %2 {offsets = [21, 0], sizes = [1, 16], strides = [1, 1]} : vector<30x16xf32> to vector<1x16xf32>
    %153 = vector.shape_cast %152 : vector<1x16xf32> to vector<16xf32>
    %154 = vector.shape_cast %153 : vector<16xf32> to vector<1x1x16xf32>
    %155 = vector.broadcast %154 : vector<1x1x16xf32> to vector<6x6x16xf32>
    %156 = arith.addf %151, %155 : vector<6x6x16xf32>
    %cst_5 = arith.constant 0.000000e+00 : f32
    %157 = vector.broadcast %cst_5 : f32 to vector<6x6x16xf32>
    %158 = arith.maximumf %156, %157 : vector<6x6x16xf32>
    %159 = vector.extract_strided_slice %2 {offsets = [22, 0], sizes = [1, 16], strides = [1, 1]} : vector<30x16xf32> to vector<1x16xf32>
    %160 = vector.shape_cast %159 : vector<1x16xf32> to vector<16xf32>
    %161 = vector.shape_cast %160 : vector<16xf32> to vector<1x1x16xf32>
    %162 = vector.broadcast %161 : vector<1x1x16xf32> to vector<6x6x16xf32>
    %163 = arith.mulf %146, %162 : vector<6x6x16xf32>
    %164 = vector.extract_strided_slice %2 {offsets = [23, 0], sizes = [1, 16], strides = [1, 1]} : vector<30x16xf32> to vector<1x16xf32>
    %165 = vector.shape_cast %164 : vector<1x16xf32> to vector<16xf32>
    %166 = vector.shape_cast %165 : vector<16xf32> to vector<1x1x16xf32>
    %167 = vector.broadcast %166 : vector<1x1x16xf32> to vector<6x6x16xf32>
    %168 = arith.mulf %158, %167 : vector<6x6x16xf32>
    %169 = arith.addf %163, %168 : vector<6x6x16xf32>
    %170 = vector.extract_strided_slice %2 {offsets = [24, 0], sizes = [1, 16], strides = [1, 1]} : vector<30x16xf32> to vector<1x16xf32>
    %171 = vector.shape_cast %170 : vector<1x16xf32> to vector<16xf32>
    %172 = vector.shape_cast %171 : vector<16xf32> to vector<1x1x16xf32>
    %173 = vector.broadcast %172 : vector<1x1x16xf32> to vector<6x6x16xf32>
    %174 = arith.mulf %146, %173 : vector<6x6x16xf32>
    %175 = vector.extract_strided_slice %2 {offsets = [25, 0], sizes = [1, 16], strides = [1, 1]} : vector<30x16xf32> to vector<1x16xf32>
    %176 = vector.shape_cast %175 : vector<1x16xf32> to vector<16xf32>
    %177 = vector.shape_cast %176 : vector<16xf32> to vector<1x1x16xf32>
    %178 = vector.broadcast %177 : vector<1x1x16xf32> to vector<6x6x16xf32>
    %179 = arith.mulf %158, %178 : vector<6x6x16xf32>
    %180 = arith.addf %174, %179 : vector<6x6x16xf32>
    %181 = vector.extract_strided_slice %2 {offsets = [26, 0], sizes = [1, 16], strides = [1, 1]} : vector<30x16xf32> to vector<1x16xf32>
    %182 = vector.shape_cast %181 : vector<1x16xf32> to vector<16xf32>
    %183 = vector.shape_cast %182 : vector<16xf32> to vector<1x1x16xf32>
    %184 = vector.broadcast %183 : vector<1x1x16xf32> to vector<6x6x16xf32>
    %185 = arith.mulf %169, %184 : vector<6x6x16xf32>
    %186 = vector.extract_strided_slice %2 {offsets = [27, 0], sizes = [1, 16], strides = [1, 1]} : vector<30x16xf32> to vector<1x16xf32>
    %187 = vector.shape_cast %186 : vector<1x16xf32> to vector<16xf32>
    %188 = vector.shape_cast %187 : vector<16xf32> to vector<1x1x16xf32>
    %189 = vector.broadcast %188 : vector<1x1x16xf32> to vector<6x6x16xf32>
    %190 = arith.addf %185, %189 : vector<6x6x16xf32>
    %cst_6 = arith.constant 0.000000e+00 : f32
    %191 = vector.broadcast %cst_6 : f32 to vector<6x6x16xf32>
    %192 = arith.maximumf %190, %191 : vector<6x6x16xf32>
    %193 = vector.extract_strided_slice %2 {offsets = [28, 0], sizes = [1, 16], strides = [1, 1]} : vector<30x16xf32> to vector<1x16xf32>
    %194 = vector.shape_cast %193 : vector<1x16xf32> to vector<16xf32>
    %195 = vector.shape_cast %194 : vector<16xf32> to vector<1x1x16xf32>
    %196 = vector.broadcast %195 : vector<1x1x16xf32> to vector<6x6x16xf32>
    %197 = arith.mulf %180, %196 : vector<6x6x16xf32>
    %198 = vector.extract_strided_slice %2 {offsets = [29, 0], sizes = [1, 16], strides = [1, 1]} : vector<30x16xf32> to vector<1x16xf32>
    %199 = vector.shape_cast %198 : vector<1x16xf32> to vector<16xf32>
    %200 = vector.shape_cast %199 : vector<16xf32> to vector<1x1x16xf32>
    %201 = vector.broadcast %200 : vector<1x1x16xf32> to vector<6x6x16xf32>
    %202 = arith.addf %197, %201 : vector<6x6x16xf32>
    %cst_7 = arith.constant 0.000000e+00 : f32
    %203 = vector.broadcast %cst_7 : f32 to vector<6x6x16xf32>
    %204 = arith.maximumf %202, %203 : vector<6x6x16xf32>
    %cst_8 = arith.constant dense<0.000000e+00> : vector<6x16xf32>
    %205 = vector.multi_reduction <add>, %192, %cst_8 [0] : vector<6x6x16xf32> to vector<6x16xf32>
    %cst_9 = arith.constant dense<0.000000e+00> : vector<16xf32>
    %206 = vector.multi_reduction <add>, %205, %cst_9 [0] : vector<6x16xf32> to vector<16xf32>
    %207 = vector.shape_cast %206 : vector<16xf32> to vector<1x16xf32>
    %cst_10 = arith.constant 0.027777778 : f32
    %208 = vector.broadcast %cst_10 : f32 to vector<1x16xf32>
    %209 = arith.mulf %207, %208 : vector<1x16xf32>
    %cst_11 = arith.constant dense<0.000000e+00> : vector<6x16xf32>
    %210 = vector.multi_reduction <add>, %204, %cst_11 [0] : vector<6x6x16xf32> to vector<6x16xf32>
    %cst_12 = arith.constant dense<0.000000e+00> : vector<16xf32>
    %211 = vector.multi_reduction <add>, %210, %cst_12 [0] : vector<6x16xf32> to vector<16xf32>
    %212 = vector.shape_cast %211 : vector<16xf32> to vector<1x16xf32>
    %cst_13 = arith.constant 0.027777778 : f32
    %213 = vector.broadcast %cst_13 : f32 to vector<1x16xf32>
    %214 = arith.mulf %212, %213 : vector<1x16xf32>
    %c0_14 = arith.constant 0 : index
    %c0_15 = arith.constant 0 : index
    %c0_16 = arith.constant 0 : index
    %215 = vector.load %arg3[%c0_14, %c0_15, %c0_16] : memref<2x16x4xf32, #tpu.memory_space<vmem>>, vector<1x16x4xf32>
    %216 = vector.shape_cast %215 : vector<1x16x4xf32> to vector<16x4xf32>
    %cst_17 = arith.constant dense<0.000000e+00> : vector<1x4xf32>
    %217 = tpu.matmul %209, %216, %cst_17 {dimension_numbers = #tpu.dot_dimension_numbers<[1], [0], [0], [1], [0, 0, 1, 1], [], []>} : vector<1x16xf32>, vector<16x4xf32>, vector<1x4xf32> -> vector<1x4xf32>
    %c1 = arith.constant 1 : index
    %c0_18 = arith.constant 0 : index
    %c0_19 = arith.constant 0 : index
    %218 = vector.load %arg3[%c1, %c0_18, %c0_19] : memref<2x16x4xf32, #tpu.memory_space<vmem>>, vector<1x16x4xf32>
    %219 = vector.shape_cast %218 : vector<1x16x4xf32> to vector<16x4xf32>
    %cst_20 = arith.constant dense<0.000000e+00> : vector<1x4xf32>
    %220 = tpu.matmul %214, %219, %cst_20 {dimension_numbers = #tpu.dot_dimension_numbers<[1], [0], [0], [1], [0, 0, 1, 1], [], []>} : vector<1x16xf32>, vector<16x4xf32>, vector<1x4xf32> -> vector<1x4xf32>
    %221 = arith.addf %217, %220 : vector<1x4xf32>
    %cst_21 = arith.constant 0.000000e+00 : f32
    %222 = vector.broadcast %cst_21 : f32 to vector<1x4xf32>
    %223 = arith.maximumf %221, %222 : vector<1x4xf32>
    %c0_22 = arith.constant 0 : index
    %c0_23 = arith.constant 0 : index
    %c0_24 = arith.constant 0 : index
    %224 = vector.load %arg4[%c0_22, %c0_23, %c0_24] : memref<2x4x16xf32, #tpu.memory_space<vmem>>, vector<1x4x16xf32>
    %225 = vector.shape_cast %224 : vector<1x4x16xf32> to vector<4x16xf32>
    %cst_25 = arith.constant dense<0.000000e+00> : vector<1x16xf32>
    %226 = tpu.matmul %223, %225, %cst_25 {dimension_numbers = #tpu.dot_dimension_numbers<[1], [0], [0], [1], [0, 0, 1, 1], [], []>} : vector<1x4xf32>, vector<4x16xf32>, vector<1x16xf32> -> vector<1x16xf32>
    %227 = arith.negf %226 : vector<1x16xf32>
    %228 = math.exp %227 : vector<1x16xf32>
    %cst_26 = arith.constant 1.000000e+00 : f32
    %229 = vector.broadcast %cst_26 : f32 to vector<1x16xf32>
    %230 = arith.addf %229, %228 : vector<1x16xf32>
    %231 = arith.divf %229, %230 : vector<1x16xf32>
    %c1_27 = arith.constant 1 : index
    %c0_28 = arith.constant 0 : index
    %c0_29 = arith.constant 0 : index
    %232 = vector.load %arg4[%c1_27, %c0_28, %c0_29] : memref<2x4x16xf32, #tpu.memory_space<vmem>>, vector<1x4x16xf32>
    %233 = vector.shape_cast %232 : vector<1x4x16xf32> to vector<4x16xf32>
    %cst_30 = arith.constant dense<0.000000e+00> : vector<1x16xf32>
    %234 = tpu.matmul %223, %233, %cst_30 {dimension_numbers = #tpu.dot_dimension_numbers<[1], [0], [0], [1], [0, 0, 1, 1], [], []>} : vector<1x4xf32>, vector<4x16xf32>, vector<1x16xf32> -> vector<1x16xf32>
    %235 = arith.negf %234 : vector<1x16xf32>
    %236 = math.exp %235 : vector<1x16xf32>
    %cst_31 = arith.constant 1.000000e+00 : f32
    %237 = vector.broadcast %cst_31 : f32 to vector<1x16xf32>
    %238 = arith.addf %237, %236 : vector<1x16xf32>
    %239 = arith.divf %237, %238 : vector<1x16xf32>
    %240 = arith.mulf %209, %231 : vector<1x16xf32>
    %241 = arith.mulf %214, %239 : vector<1x16xf32>
    %c0_32 = arith.constant 0 : index
    %c0_33 = arith.constant 0 : index
    %c0_34 = arith.constant 0 : index
    %242 = vector.load %arg5[%c0_32, %c0_33, %c0_34] : memref<2x16x128xf32, #tpu.memory_space<vmem>>, vector<1x16x128xf32>
    %243 = vector.shape_cast %242 : vector<1x16x128xf32> to vector<16x128xf32>
    %cst_35 = arith.constant dense<0.000000e+00> : vector<1x128xf32>
    %244 = tpu.matmul %240, %243, %cst_35 {dimension_numbers = #tpu.dot_dimension_numbers<[1], [0], [0], [1], [0, 0, 1, 1], [], []>} : vector<1x16xf32>, vector<16x128xf32>, vector<1x128xf32> -> vector<1x128xf32>
    %c1_36 = arith.constant 1 : index
    %c0_37 = arith.constant 0 : index
    %c0_38 = arith.constant 0 : index
    %245 = vector.load %arg5[%c1_36, %c0_37, %c0_38] : memref<2x16x128xf32, #tpu.memory_space<vmem>>, vector<1x16x128xf32>
    %246 = vector.shape_cast %245 : vector<1x16x128xf32> to vector<16x128xf32>
    %cst_39 = arith.constant dense<0.000000e+00> : vector<1x128xf32>
    %247 = tpu.matmul %241, %246, %cst_39 {dimension_numbers = #tpu.dot_dimension_numbers<[1], [0], [0], [1], [0, 0, 1, 1], [], []>} : vector<1x16xf32>, vector<16x128xf32>, vector<1x128xf32> -> vector<1x128xf32>
    %248 = arith.addf %244, %247 : vector<1x128xf32>
    %c0_40 = arith.constant 0 : index
    %c0_41 = arith.constant 0 : index
    %249 = vector.load %arg6[%c0_40, %c0_41] : memref<1x128xf32, #tpu.memory_space<vmem>>, vector<1x128xf32>
    %250 = arith.addf %248, %249 : vector<1x128xf32>
    %c0_42 = arith.constant 0 : index
    %c0_43 = arith.constant 0 : index
    %c0_44 = arith.constant 0 : index
    %251 = vector.load %arg7[%c0_42, %c0_43, %c0_44] : memref<1x1x128xf32, #tpu.memory_space<vmem>>, vector<1x1x128xf32>
    %252 = vector.shape_cast %251 : vector<1x1x128xf32> to vector<1x128xf32>
    %253 = vector.shape_cast %250 : vector<1x128xf32> to vector<1x1x128xf32>
    tpu.vector_store %arg7[%c0_42, %c0_43, %c0_44], %253 {strides = array<i32>} : memref<1x1x128xf32, #tpu.memory_space<vmem>>, vector<1x1x128xf32>,
    return
  }
  func.func @transform_0(%arg0: i32) -> (i32, i32, i32, i32) {
    %c0_i32 = arith.constant 0 : i32
    %c0_i32_0 = arith.constant 0 : i32
    %c0_i32_1 = arith.constant 0 : i32
    %c0_i32_2 = arith.constant 0 : i32
    return %arg0, %c0_i32, %c0_i32_0, %c0_i32_1 : i32, i32, i32, i32
  }
  func.func @transform_1(%arg0: i32) -> (i32, i32) {
    %c0_i32 = arith.constant 0 : i32
    %c0_i32_0 = arith.constant 0 : i32
    %c0_i32_1 = arith.constant 0 : i32
    return %c0_i32, %c0_i32_0 : i32, i32
  }
  func.func @transform_2(%arg0: i32) -> (i32, i32, i32) {
    %c0_i32 = arith.constant 0 : i32
    %c0_i32_0 = arith.constant 0 : i32
    %c0_i32_1 = arith.constant 0 : i32
    %c0_i32_2 = arith.constant 0 : i32
    return %c0_i32, %c0_i32_0, %c0_i32_1 : i32, i32, i32
  }
  func.func @transform_3(%arg0: i32) -> (i32, i32, i32) {
    %c0_i32 = arith.constant 0 : i32
    %c0_i32_0 = arith.constant 0 : i32
    %c0_i32_1 = arith.constant 0 : i32
    %c0_i32_2 = arith.constant 0 : i32
    return %c0_i32, %c0_i32_0, %c0_i32_1 : i32, i32, i32
  }
  func.func @transform_4(%arg0: i32) -> (i32, i32, i32) {
    %c0_i32 = arith.constant 0 : i32
    %c0_i32_0 = arith.constant 0 : i32
    %c0_i32_1 = arith.constant 0 : i32
    %c0_i32_2 = arith.constant 0 : i32
    return %c0_i32, %c0_i32_0, %c0_i32_1 : i32, i32, i32
  }
  func.func @transform_5(%arg0: i32) -> (i32, i32) {
    %c0_i32 = arith.constant 0 : i32
    %c0_i32_0 = arith.constant 0 : i32
    %c0_i32_1 = arith.constant 0 : i32
    return %c0_i32, %c0_i32_0 : i32, i32
  }
  func.func @transform_6(%arg0: i32) -> (i32, i32, i32) {
    %c0_i32 = arith.constant 0 : i32
    %c0_i32_0 = arith.constant 0 : i32
    %c0_i32_1 = arith.constant 0 : i32
    return %arg0, %c0_i32, %c0_i32_0 : i32, i32, i32
  }
}

</mosaic_0001>

<bundles_post_ra>
// kernel: tpu_custom_call.1
= control target key start
LH: loop header
LB: loop body
LE: loop exit
PB: predicated region body
PF: predicated region fallthrough
CT: control target
= control target key end

     0   :  { %11 = vsyncpa [#allocation3], 0  ;;  %s2616_s0 = inlined_call_operand.vmem [shape: f32[2,10,10,16], index: 0, kind: input, shape index: {}]   ;;  %s2617_s1 = inlined_call_operand.vmem [shape: f32[30,16], index: 1, kind: input, shape index: {}]   ;;  %s2618_s2 = inlined_call_operand.vmem [shape: f32[2,16,4], index: 2, kind: input, shape index: {}]   ;;  %s2619_s3 = inlined_call_operand.vmem [shape: f32[2,4,16], index: 3, kind: input, shape index: {}]   ;;  %s2620_s4 = inlined_call_operand.vmem [shape: f32[2,16,128], index: 4, kind: input, shape index: {}]   ;;  %s2621_s5 = inlined_call_operand.vmem [shape: f32[1,128], index: 5, kind: input, shape index: {}]   ;;  %s2622_s6 = inlined_call_operand.hbm [shape: f32[2,1,128], index: 6, kind: output, shape index: {}]  }
   0x1   :  { %13 = vsyncpa [#allocation3 + $0x1], 0  ;;  %s1914_s21 = smov 0   ;;  %s1916_s22 = smov 0  }
   0x2   :  { %s1918_s23 = smov 0   ;;  %s1920_s24 = smov 0  }
   0x3 LB: > { %s1935_s25 = sadd.s32 4294967295, %s1873_s24   ;;  %s1669_s26 = sadd.s32 4294967294, %s1873_s24   ;;  %s1873_s24 = sphi %s1920_s24, %s2669_s24   ;;  %s1869_s23 = sphi %s1918_s23, %s2668_s23   ;;  %s1865_s22 = sphi %s1916_s22, %s2667_s22   ;;  %s1861_s21 = sphi %s1914_s21, %s2666_s21  }
   0x4   : > { %s1939_s27 = sadd.s32 1, %s1873_s24   ;;  %s157_s28 = sadd.s32 1, %s1869_s23 }
   0x5   : > { %s154_s29 = ssub.s32 %s1873_s24, %s1939_s27  ;;  %p167_p0 = scmp.ne.s32.totalorder %s1869_s23, %s1865_s22 }
   0x6   : > { %p155_p1 = scmp.eq.s32.totalorder %s154_s29, 0  ;;  %p168_p2 = scmp.eq.s32.totalorder %s1935_s25, 1 }
   0x7   : > { %p173_p3 = scmp.ne.s32.totalorder %s1865_s22, %s1861_s21  ;;  %p174_p4 = scmp.eq.s32.totalorder %s1669_s26, 1 }
   0x8   : > { %s1950_s30 = scalar_select %p155_p1, %s1869_s23, %s157_s28  }
   0x9   : > { %p1952_p5 = por %p168_p2, %p167_p0  ;;  %p1956_p6 = por %p174_p4, %p173_p3 }
   0xa   : > { %p1672_p7 = scmp.ge.s32.totalorder %s1873_s24, 1  ;;  %p215_p8 = scmp.lt.s32.totalorder %s1873_s24, 3 }
   0xc   : > { %p216_p9 = pnand %p1672_p7, %p215_p8 }
   0xe   : > { %219 = sbr.rel (%p216_p9) target bundleno = 880 (0x370), region = 44 }
  0x15   : > { %v1674_v0 = vld [vmem:[%s2618_s2 + $0x10] sm:$0xff]  ;;  %v1675_v1 = vld [vmem:[%s2618_s2 + $0x18] sm:$0xff]  ;;  %p244_p10 = scmp.lt.s32.totalorder %s1935_s25, 1  ;;  %v439_v2 = vlaneseq  ;;  %v2623_v3 = vmov 0.0|0.0   ;;  %vm1876_vm0 = vmmov 0   ;;  %v2625_v5 = vmov 0.0  }
  0x16   : > { %1746 = vmatprep.subr.bf16.mxu0 %v2623_v3  ;;  %v1747_v4 = vpack.c.bf16 %v1675_v1, %v1674_v0  ;;  %1712 = vmatprep.mubr.msk.f32.mxu0 %vm1876_vm0, %v2625_v5  ;;  %v269_v7 = vld [vmem:[%s2617_s1] sm:$0xff]  ;;  %v1983_v8 = vld [vmem:[%s2617_s1 + $0x8] sm:$0xff]  ;;  %vm289_vm1 = vcmask 1046528   ;;  %v2065_v35 = vld [vmem:[%s2617_s1 + $0x10] sm:$0xff]  ;;  %vm330_vm2 = vcmask 1045504   ;;  %vm1087_vm3 = vcmask 128000  }
  0x17   : > { %s245_s13 = scalar_select %p244_p10, %s1935_s25, 1  ;;  %v440_v6 = vshrl.u32 %v439_v2, 7  ;;  %1722 = vmatprep.subr.mxu1 %v2625_v5  ;;  %1724 = vmatprep.mubr.msk.f32.mxu1 %vm1876_vm0, %v2625_v5  ;;  %2652 = vst [vmem:[#allocation13_spill] sm:$0xff] %v2065_v35  ;;  %vm1131_vm4 = vcmask 130048   ;;  %vm1284_vm5 = vcmask 1043456   ;;  %vm1280_vm6 = vcmask 31744  }
  0x18   : > { %1748 = vmatpush3.bf16.msra.mxu0 %v1747_v4  ;;  %s242_s12 = sand.u32 1, %s1865_s22   ;;  %s1689_s15 = sshll.u32 %s1935_s25, 4 }
  0x19   : > { %1749 = vmatprep.subr.bf16.mxu0 %v2623_v3  ;;  %s1760_s16 = smul.u32 160, %s245_s13  ;;  %v1985_v9 = vsub.s32 0, %v440_v6  ;;  %v1987_v10 = vsub.s32 1, %v440_v6  ;;  %v1989_v11 = vsub.s32 2, %v440_v6  ;;  %v1991_v12 = vsub.s32 3, %v440_v6  ;;  %s2574_s20 = scalar_lea.hbm %s2622_s6, %s1689_s15 }
  0x1a   : > { %v1993_v13 = vsub.s32 4, %v440_v6  ;;  %v1995_v14 = vsub.s32 5, %v440_v6  ;;  %v2009_v17 = vsub.s32 6, %v440_v6  ;;  %v2011_v18 = vsub.s32 7, %v440_v6  ;;  %s1878_s25 = smov [#allocation2]  }
  0x1b   : > { %2644 = vst [vmem:[#allocation5_spill] sm:$0xff] %v1985_v9  ;;  %2645 = vst [vmem:[#allocation6_spill] sm:$0xff] %v1987_v10  ;;  %s2000_s26 = scalar_lea.vmem %s2616_s0, %s1760_s16  ;;  %v2003_v15 = vrot.slane %v269_v7, %v1985_v9  ;;  %v2007_v16 = vrot.slane %v1983_v8, %v1987_v10  ;;  %v2023_v22 = vrot.slane %v269_v7, %v1987_v10  ;;  %s243_s16 = scalar_lea.vmem [#allocation2], %s242_s12 }
  0x1c   : > { %2646 = vst [vmem:[#allocation7_spill] sm:$0xff] %v1989_v11  ;;  %2647 = vst [vmem:[#allocation8_spill] sm:$0xff] %v1991_v12  ;;  %v2014_v19 = vld [vmem:[%s2000_s26] sm:$0xff]  ;;  %v2017_v20 = vld [vmem:[%s2000_s26 + $0x8] sm:$0x3]  ;;  %v2027_v23 = vrot.slane %v1983_v8, %v1989_v11  ;;  %v2030_v24 = vrot.slane %v269_v7, %v1989_v11  ;;  %v2034_v25 = vrot.slane %v1983_v8, %v1991_v12  ;;  %s1614_s17 = sshll.u32 %s243_s16, 4  ;;  %s2576_s17 = int_to_ptr.vmem [resolvable:$true] %s1614_s17 }
  0x1d   : > { %2648 = vst [vmem:[#allocation9_spill] sm:$0xff] %v1993_v13  ;;  %2649 = vst [vmem:[#allocation10_spill] sm:$0xff] %v1995_v14  ;;  %v2020_v21 = vld [vmem:[%s2000_s26 + $0x10] sm:$0xff]  ;;  %v2037_v26 = vld [vmem:[%s2000_s26 + $0x18] sm:$0x3]  ;;  %v290_v29 = vrot.slane %v2014_v19, 1  ;;  %v2047_v30 = vrot.slane %v269_v7, %v1991_v12  ;;  %v2051_v31 = vrot.slane %v1983_v8, %v1993_v13  ;;  %v2054_v32 = vrot.slane %v269_v7, %v1993_v13 }
  0x1e   : > { %2650 = vst [vmem:[#allocation11_spill] sm:$0xff] %v2009_v17  ;;  %2651 = vst [vmem:[#allocation12_spill] sm:$0xff] %v2011_v18  ;;  %v2040_v27 = vld [vmem:[%s2000_s26 + $0x20] sm:$0xff]  ;;  %v2043_v28 = vld [vmem:[%s2000_s26 + $0x28] sm:$0x3]  ;;  %v291_v36 = vrot.slane %v2017_v20, 1  ;;  %v2071_v38 = vrot.slane %v1983_v8, %v1995_v14  ;;  %v2074_v39 = vrot.slane %v269_v7, %v1995_v14  ;;  %v2086_v44 = vrot.slane %v1983_v8, %v2009_v17 }
  0x1f   : > { %v2057_v33 = vld [vmem:[%s2000_s26 + $0x30] sm:$0xff]  ;;  %v2060_v34 = vld [vmem:[%s2000_s26 + $0x38] sm:$0x3]  ;;  %v293_v37 = vrot.slane %v2020_v21, 1  ;;  %v2077_v40 = vld [vmem:[%s2000_s26 + $0x40] sm:$0xff]  ;;  %v294_v43 = vrot.slane %v2037_v26, 1  ;;  %v2089_v45 = vrot.slane %v269_v7, %v2009_v17  ;;  %v2093_v46 = vrot.slane %v1983_v8, %v2011_v18 }
  0x20   : > { %v258_v41 = vld [vmem:[%s2000_s26 + $0x48] sm:$0x3]  ;;  %v2081_v42 = vld [vmem:[%s2000_s26 + $0x58] sm:$0x3]  ;;  %v2096_v47 = vld [vmem:[%s2000_s26 + $0x50] sm:$0xff]  ;;  %v292_v50 = vsel %vm289_vm1, %v290_v29, %v291_v36  ;;  %v296_v51 = vrot.slane %v2040_v27, 1  ;;  %v2106_v53 = vrot.slane %v269_v7, %v2011_v18  ;;  %v2119_v59 = vrot.slane %v2065_v35, %v1985_v9 }
  0x21   : > { %v2099_v48 = vld [vmem:[%s2000_s26 + $0x60] sm:$0xff]  ;;  %v262_v49 = vld [vmem:[%s2000_s26 + $0x68] sm:$0x3]  ;;  %v297_v52 = vrot.slane %v2043_v28, 1  ;;  %v2109_v54 = vld [vmem:[%s2000_s26 + $0x70] sm:$0xff]  ;;  %v2113_v56 = vsel %vm289_vm1, %v293_v37, %v294_v43  ;;  %v299_v57 = vrot.slane %v2057_v33, 1  ;;  %v322_v58 = vmax.f32 %v2014_v19, %v292_v50 }
  0x22   : > { %v264_v55 = vld [vmem:[%s2000_s26 + $0x78] sm:$0x3]  ;;  %v300_v61 = vrot.slane %v2060_v34, 1  ;;  %v302_v62 = vrot.slane %v2077_v40, 1  ;;  %v303_v63 = vrot.slane %v258_v41, 1  ;;  %v305_v0 = vrot.slane %v2096_v47, 1 }
  0x23   : > { %v2122_v60 = vsel %vm289_vm1, %v296_v51, %v297_v52  ;;  %v306_v1 = vrot.slane %v2081_v42, 1  ;;  %v308_v2 = vrot.slane %v2099_v48, 1  ;;  %v309_v4 = vrot.slane %v262_v49, 1  ;;  %v266_v11 = vld [vmem:[%s2000_s26 + $0x88] sm:$0x3]  ;;  %s1811_s28 = scalar_lea.vmem %s2576_s17, 16 }
  0x24   : > { %v2130_v6 = vsel %vm289_vm1, %v299_v57, %v300_v61  ;;  %v2133_v7 = vsel %vm289_vm1, %v302_v62, %v303_v63  ;;  %v311_v29 = vrot.slane %v2109_v54, 1  ;;  %v312_v36 = vrot.slane %v264_v55, 1  ;;  %p1812_p11 = scmp.ne.s32.totalorder %s2576_s17, %s1811_s28  ;;  %s1815_s29 = sshll.u32 %s1878_s25, 4  ;;  %s1816_s29 = int_to_ptr.vmem [resolvable:$false] %s1815_s29 }
  0x25   : > { %v2137_v37 = vsel %vm289_vm1, %v305_v0, %v306_v1  ;;  %v2140_v43 = vsel %vm289_vm1, %v308_v2, %v309_v4  ;;  %v323_v50 = vmax.f32 %v2020_v21, %v2113_v56  ;;  %v324_v51 = vmax.f32 %v2040_v27, %v2122_v60  ;;  %s1817_s9 = scalar_lea.vmem %s1816_s29, 32  ;;  %p1818_p0 = scmp.lt.s32.totalorder %s2576_s17, %s1816_s29 }
  0x26   : > { %v2147_v52 = vsel %vm289_vm1, %v311_v29, %v312_v36  ;;  %v325_v57 = vmax.f32 %v2057_v33, %v2130_v6  ;;  %v326_v61 = vmax.f32 %v2077_v40, %v2133_v7  ;;  %v327_v62 = vmax.f32 %v2096_v47, %v2137_v37  ;;  %p1813_p12 = pnand %p1812_p11, %p1952_p5  ;;  %p1819_p1 = scmp.lt.s32.totalorder %s1817_s9, %s1811_s28 }
  0x27   : > { %v328_v63 = vmax.f32 %v2099_v48, %v2140_v43  ;;  %v329_v0 = vmax.f32 %v2109_v54, %v2147_v52  ;;  %v331_v1 = vrot.slane %v2014_v19, 2  ;;  %v332_v2 = vrot.slane %v2017_v20, 2 }
  0x28   : > { %v334_v4 = vrot.slane %v2020_v21, 2  ;;  %v335_v29 = vrot.slane %v2037_v26, 2  ;;  %v337_v36 = vrot.slane %v2040_v27, 2  ;;  %v338_v3 = vrot.slane %v2043_v28, 2  ;;  %p1814_p13 = pneg %p1813_p12  ;;  %p1820_p2 = por %p1819_p1, %p1818_p0 }
  0x29   : > { %v333_v5 = vsel %vm330_vm2, %v331_v1, %v332_v2  ;;  %v340_v18 = vrot.slane %v2057_v33, 2  ;;  %v341_v17 = vrot.slane %v2060_v34, 2  ;;  %v343_v14 = vrot.slane %v2077_v40, 2 }
  0x2a   : > { %v336_v19 = vsel %vm330_vm2, %v334_v4, %v335_v29  ;;  %v2171_v20 = vsel %vm330_vm2, %v337_v36, %v338_v3  ;;  %v344_v26 = vrot.slane %v258_v41, 2  ;;  %v346_v13 = vrot.slane %v2096_v47, 2  ;;  %p1821_p3 = pnand %p1820_p2, %p1814_p13 }
  0x2b   : > { %v2175_v28 = vsel %vm330_vm2, %v340_v18, %v341_v17  ;;  %v347_v1 = vrot.slane %v2081_v42, 2  ;;  %v349_v2 = vrot.slane %v2099_v48, 2  ;;  %v350_v34 = vrot.slane %v262_v49, 2  ;;  %v265_v42 = vld [vmem:[%s2000_s26 + $0x80] sm:$0xff] }
  0x2c   : > { %v2180_v12 = vsel %vm330_vm2, %v343_v14, %v344_v26  ;;  %v352_v4 = vrot.slane %v2109_v54, 2  ;;  %v353_v29 = vrot.slane %v264_v55, 2  ;;  %v363_v3 = vmax.f32 %v322_v58, %v333_v5 }
  0x2d   : > { %v2184_v36 = vsel %vm330_vm2, %v346_v13, %v347_v1  ;;  %v2187_v41 = vsel %vm330_vm2, %v349_v2, %v350_v34  ;;  %v364_v17 = vmax.f32 %v323_v50, %v336_v19  ;;  %v365_v18 = vmax.f32 %v324_v51, %v2171_v20 }
  0x2e   : > { %v2193_v49 = vsel %vm330_vm2, %v352_v4, %v353_v29  ;;  %v366_v14 = vmax.f32 %v325_v57, %v2175_v28  ;;  %v367_v26 = vmax.f32 %v326_v61, %v2180_v12  ;;  %v368_v5 = vmax.f32 %v327_v62, %v2184_v36 }
  0x2f   : > { %v369_v13 = vmax.f32 %v328_v63, %v2187_v41  ;;  %v370_v55 = vmax.f32 %v329_v0, %v2193_v49  ;;  %v371_v58 = vmax.f32 %v363_v3, %v2020_v21  ;;  %v372_v50 = vmax.f32 %v364_v17, %v2040_v27 }
  0x30   : > { %v373_v51 = vmax.f32 %v365_v18, %v2057_v33  ;;  %v374_v1 = vmax.f32 %v366_v14, %v2077_v40  ;;  %v375_v2 = vmax.f32 %v367_v26, %v2096_v47  ;;  %v376_v57 = vmax.f32 %v368_v5, %v2099_v48 }
  0x31   : > { %v377_v61 = vmax.f32 %v369_v13, %v2109_v54  ;;  %v378_v62 = vmax.f32 %v370_v55, %v265_v42  ;;  %v381_v34 = vrot.slane %v265_v42, 1  ;;  %v382_v63 = vrot.slane %v266_v11, 1 }
  0x32   : > { %v385_v0 = vmax.f32 %v371_v58, %v2113_v56  ;;  %v386_v21 = vmax.f32 %v372_v50, %v2122_v60  ;;  %v387_v4 = vmax.f32 %v373_v51, %v2130_v6  ;;  %v388_v29 = vmax.f32 %v374_v1, %v2133_v7  ;;  %v267_v56 = vld [vmem:[%s2000_s26 + $0x90] sm:$0xff] }
  0x33   : > { %v383_v3 = vsel %vm289_vm1, %v381_v34, %v382_v63  ;;  %v389_v17 = vmax.f32 %v375_v2, %v2137_v37  ;;  %v390_v18 = vmax.f32 %v376_v57, %v2140_v43  ;;  %v391_v14 = vmax.f32 %v377_v61, %v2147_v52  ;;  %v268_v34 = vld [vmem:[%s2000_s26 + $0x98] sm:$0x3]  ;;  %s1602_s26 = scalar_lea.sflag [#allocation3], %s242_s12 }
  0x34   : > { %v392_v26 = vmax.f32 %v378_v62, %v383_v3  ;;  %v393_v5 = vrot.slane %v265_v42, 2  ;;  %v394_v13 = vrot.slane %v266_v11, 2  ;;  %v397_v55 = vmax.f32 %v385_v0, %v336_v19 }
  0x35   : > { %v398_v58 = vmax.f32 %v386_v21, %v2171_v20  ;;  %v399_v50 = vmax.f32 %v387_v4, %v2175_v28  ;;  %v400_v51 = vmax.f32 %v388_v29, %v2180_v12  ;;  %v401_v1 = vmax.f32 %v389_v17, %v2184_v36 }
  0x36   : > { %v395_v2 = vsel %vm330_vm2, %v393_v5, %v394_v13  ;;  %v402_v57 = vmax.f32 %v390_v18, %v2187_v41  ;;  %v403_v61 = vmax.f32 %v391_v14, %v2193_v49  ;;  %v405_v62 = vmax.f32 %v397_v55, %v2040_v27 }
  0x37   : > { %v404_v11 = vmax.f32 %v392_v26, %v395_v2  ;;  %v406_v19 = vmax.f32 %v398_v58, %v2057_v33  ;;  %v407_v63 = vmax.f32 %v399_v50, %v2077_v40  ;;  %v408_v0 = vmax.f32 %v400_v51, %v2096_v47 }
  0x38   : > { %v409_v21 = vmax.f32 %v401_v1, %v2099_v48  ;;  %v410_v4 = vmax.f32 %v402_v57, %v2109_v54  ;;  %v411_v29 = vmax.f32 %v403_v61, %v265_v42  ;;  %v415_v17 = vrot.slane %v267_v56, 1 }
  0x39   : > { %v412_v5 = vmax.f32 %v404_v11, %v267_v56  ;;  %v416_v13 = vrot.slane %v268_v34, 1  ;;  %v419_v18 = vmax.f32 %v405_v62, %v2122_v60  ;;  %v420_v14 = vmax.f32 %v406_v19, %v2130_v6 }
  0x3a   : > { %v421_v27 = vmax.f32 %v407_v63, %v2133_v7  ;;  %v422_v33 = vmax.f32 %v408_v0, %v2137_v37  ;;  %v423_v40 = vmax.f32 %v409_v21, %v2140_v43  ;;  %v424_v47 = vmax.f32 %v410_v4, %v2147_v52 }
  0x3b   : > { %v417_v48 = vsel %vm289_vm1, %v415_v17, %v416_v13  ;;  %v425_v26 = vmax.f32 %v411_v29, %v383_v3  ;;  %v427_v54 = vrot.slane %v267_v56, 2  ;;  %v428_v42 = vrot.slane %v268_v34, 2 }
  0x3c   : > { %v426_v55 = vmax.f32 %v412_v5, %v417_v48  ;;  %v2238_v58 = vmax.f32 %v419_v18, %v2171_v20  ;;  %v2242_v60 = vrot.slane %v1983_v8, %v1985_v9  ;;  %v2246_v6 = vrot.slane %v2065_v35, %v1987_v10 }
  0x3d   : > { %v429_v7 = vsel %vm330_vm2, %v427_v54, %v428_v42  ;;  %v2250_v37 = vmax.f32 %v420_v14, %v2175_v28  ;;  %v2253_v43 = vmax.f32 %v421_v27, %v2180_v12  ;;  %v2256_v52 = vmax.f32 %v422_v33, %v2184_v36 }
  0x3e   : > { %2653 = vst [vmem:[#allocation14_spill] sm:$0xff] %v2246_v6  ;;  %v2259_v20 = vmax.f32 %v423_v40, %v2187_v41  ;;  %v2262_v8 = vmax.f32 %v424_v47, %v2193_v49  ;;  %v2264_v3 = vmax.f32 %v425_v26, %v395_v2  ;;  %v2266_v56 = vmax.f32 %v426_v55, %v429_v7 }
  0x3f   : > { %v443_v28 = vmul.f32 %v2003_v15, %v2238_v58  ;;  %v444_v12 = vmul.f32 %v2003_v15, %v2250_v37  ;;  %v445_v36 = vmul.f32 %v2003_v15, %v2253_v43  ;;  %v446_v41 = vmul.f32 %v2003_v15, %v2256_v52 }
  0x40   : > { %v447_v49 = vmul.f32 %v2003_v15, %v2259_v20  ;;  %v448_v50 = vmul.f32 %v2003_v15, %v2262_v8  ;;  %v453_v51 = vmul.f32 %v2007_v16, %v2238_v58  ;;  %v454_v1 = vmul.f32 %v2007_v16, %v2250_v37 }
  0x41   : > { %v455_v34 = vmul.f32 %v2007_v16, %v2253_v43  ;;  %v456_v2 = vmul.f32 %v2007_v16, %v2256_v52  ;;  %v463_v57 = vmul.f32 %v2023_v22, %v2238_v58  ;;  %v464_v61 = vmul.f32 %v2023_v22, %v2250_v37 }
  0x42   : > { %v465_v15 = vmul.f32 %v2023_v22, %v2253_v43  ;;  %v466_v62 = vmul.f32 %v2023_v22, %v2256_v52  ;;  %v467_v11 = vmul.f32 %v2023_v22, %v2259_v20  ;;  %v468_v19 = vmul.f32 %v2023_v22, %v2262_v8 }
  0x43   : > { %v473_v63 = vmul.f32 %v2027_v23, %v2238_v58  ;;  %v474_v0 = vmul.f32 %v2027_v23, %v2250_v37  ;;  %v475_v21 = vmul.f32 %v2027_v23, %v2253_v43  ;;  %v476_v4 = vmul.f32 %v2027_v23, %v2256_v52 }
  0x44   : > { %v477_v29 = vmul.f32 %v2027_v23, %v2259_v20  ;;  %v478_v17 = vmul.f32 %v2027_v23, %v2262_v8  ;;  %v485_v5 = vrot.slane %v463_v57, 1  ;;  %v486_v22 = vrot.slane %v464_v61, 1 }
  0x45   : > { %v487_v13 = vrot.slane %v465_v15, 1  ;;  %v488_v18 = vrot.slane %v466_v62, 1  ;;  %v489_v14 = vrot.slane %v467_v11, 1  ;;  %v490_v27 = vrot.slane %v468_v19, 1 }
  0x46   : > { %v457_v33 = vmul.f32 %v2007_v16, %v2259_v20  ;;  %v458_v40 = vmul.f32 %v2007_v16, %v2262_v8  ;;  %v509_v47 = vrot.slane %v473_v63, 1  ;;  %v510_v48 = vrot.slane %v474_v0, 1 }
  0x47   : > { %v497_v26 = vadd.f32 %v485_v5, %v443_v28  ;;  %v498_v54 = vadd.f32 %v486_v22, %v444_v12  ;;  %v499_v42 = vadd.f32 %v487_v13, %v445_v36  ;;  %v500_v55 = vadd.f32 %v488_v18, %v446_v41 }
  0x48   : > { %v501_v7 = vadd.f32 %v489_v14, %v447_v49  ;;  %v502_v23 = vadd.f32 %v490_v27, %v448_v50  ;;  %v511_v57 = vrot.slane %v475_v21, 1  ;;  %v512_v61 = vrot.slane %v476_v4, 1 }
  0x49   : > { %v513_v15 = vrot.slane %v477_v29, 1  ;;  %v514_v62 = vrot.slane %v478_v17, 1  ;;  %v531_v11 = vmul.f32 %v2030_v24, %v2238_v58  ;;  %v532_v19 = vmul.f32 %v2030_v24, %v2250_v37 }
  0x4a   : > { %v521_v10 = vadd.f32 %v509_v47, %v453_v51  ;;  %v522_v16 = vadd.f32 %v510_v48, %v454_v1  ;;  %v523_v63 = vadd.f32 %v511_v57, %v455_v34  ;;  %v524_v0 = vadd.f32 %v512_v61, %v456_v2 }
  0x4b   : > { %v533_v28 = vmul.f32 %v2030_v24, %v2253_v43  ;;  %v534_v12 = vmul.f32 %v2030_v24, %v2256_v52  ;;  %v535_v36 = vmul.f32 %v2030_v24, %v2259_v20  ;;  %v536_v41 = vmul.f32 %v2030_v24, %v2262_v8 }
  0x4c   : > { %v541_v49 = vmul.f32 %v2034_v25, %v2238_v58  ;;  %v542_v50 = vmul.f32 %v2034_v25, %v2250_v37  ;;  %v543_v51 = vmul.f32 %v2034_v25, %v2253_v43  ;;  %v544_v1 = vmul.f32 %v2034_v25, %v2256_v52 }
  0x4d   : > { %v545_v34 = vmul.f32 %v2034_v25, %v2259_v20  ;;  %v546_v2 = vmul.f32 %v2034_v25, %v2262_v8  ;;  %v553_v21 = vrot.slane %v531_v11, 2  ;;  %v554_v24 = vrot.slane %v532_v19, 2 }
  0x4e   : > { %v555_v4 = vrot.slane %v533_v28, 2  ;;  %v556_v29 = vrot.slane %v534_v12, 2  ;;  %v557_v58 = vrot.slane %v535_v36, 2  ;;  %v558_v17 = vrot.slane %v536_v41, 2 }
  0x4f   : > { %v525_v5 = vadd.f32 %v513_v15, %v457_v33  ;;  %v526_v22 = vadd.f32 %v514_v62, %v458_v40  ;;  %v577_v13 = vrot.slane %v541_v49, 2  ;;  %v578_v18 = vrot.slane %v542_v50, 2 }
  0x50   : > { %v565_v14 = vadd.f32 %v553_v21, %v497_v26  ;;  %v566_v27 = vadd.f32 %v554_v24, %v498_v54  ;;  %v567_v47 = vadd.f32 %v555_v4, %v499_v42  ;;  %v568_v48 = vadd.f32 %v556_v29, %v500_v55 }
  0x51   : > { %v569_v57 = vadd.f32 %v557_v58, %v501_v7  ;;  %v570_v61 = vadd.f32 %v558_v17, %v502_v23  ;;  %v579_v9 = vrot.slane %v543_v51, 2  ;;  %v580_v35 = vrot.slane %v544_v1, 2 }
  0x52   : > { %v581_v6 = vrot.slane %v545_v34, 2  ;;  %v582_v25 = vrot.slane %v546_v2, 2  ;;  %v589_v11 = vadd.f32 %v577_v13, %v521_v10  ;;  %v590_v19 = vadd.f32 %v578_v18, %v522_v16 }
  0x53   : > { %v591_v28 = vadd.f32 %v579_v9, %v523_v63  ;;  %v592_v12 = vadd.f32 %v580_v35, %v524_v0  ;;  %v599_v33 = vmul.f32 %v2047_v30, %v2250_v37  ;;  %v600_v40 = vmul.f32 %v2047_v30, %v2253_v43 }
  0x54   : > { %v601_v26 = vmul.f32 %v2047_v30, %v2256_v52  ;;  %v602_v54 = vmul.f32 %v2047_v30, %v2259_v20  ;;  %v603_v42 = vmul.f32 %v2047_v30, %v2262_v8  ;;  %v604_v10 = vmul.f32 %v2047_v30, %v2264_v3 }
  0x55   : > { %v609_v9 = vmul.f32 %v2051_v31, %v2250_v37  ;;  %v610_v35 = vmul.f32 %v2051_v31, %v2253_v43  ;;  %v611_v55 = vmul.f32 %v2051_v31, %v2256_v52  ;;  %v612_v7 = vmul.f32 %v2051_v31, %v2259_v20 }
  0x56   : > { %v593_v23 = vadd.f32 %v581_v6, %v525_v5  ;;  %v594_v15 = vadd.f32 %v582_v25, %v526_v22  ;;  %v613_v62 = vmul.f32 %v2051_v31, %v2262_v8  ;;  %v614_v30 = vmul.f32 %v2051_v31, %v2264_v3 }
  0x57   : > { %v615_v16 = vadd.f32 %v599_v33, %v565_v14  ;;  %v616_v63 = vadd.f32 %v600_v40, %v566_v27  ;;  %v617_v0 = vadd.f32 %v601_v26, %v567_v47  ;;  %v618_v36 = vadd.f32 %v602_v54, %v568_v48 }
  0x58   : > { %v619_v41 = vadd.f32 %v603_v42, %v569_v57  ;;  %v620_v49 = vadd.f32 %v604_v10, %v570_v61  ;;  %v621_v50 = vadd.f32 %v609_v9, %v589_v11  ;;  %v622_v51 = vadd.f32 %v610_v35, %v590_v19 }
  0x59   : > { %v623_v1 = vadd.f32 %v611_v55, %v591_v28  ;;  %v624_v34 = vadd.f32 %v612_v7, %v592_v12  ;;  %v631_v6 = vmul.f32 %v2054_v32, %v2250_v37  ;;  %v632_v2 = vmul.f32 %v2054_v32, %v2253_v43 }
  0x5a   : > { %v633_v21 = vmul.f32 %v2054_v32, %v2256_v52  ;;  %v634_v31 = vmul.f32 %v2054_v32, %v2259_v20  ;;  %v635_v24 = vmul.f32 %v2054_v32, %v2262_v8  ;;  %v636_v4 = vmul.f32 %v2054_v32, %v2264_v3 }
  0x5b   : > { %v641_v29 = vmul.f32 %v2071_v38, %v2250_v37  ;;  %v642_v58 = vmul.f32 %v2071_v38, %v2253_v43  ;;  %v643_v17 = vmul.f32 %v2071_v38, %v2256_v52  ;;  %v644_v5 = vmul.f32 %v2071_v38, %v2259_v20 }
  0x5c   : > { %v645_v22 = vmul.f32 %v2071_v38, %v2262_v8  ;;  %v646_v13 = vmul.f32 %v2071_v38, %v2264_v3  ;;  %v653_v18 = vrot.slane %v631_v6, 1  ;;  %v654_v32 = vrot.slane %v632_v2, 1 }
  0x5d   : > { %v655_v14 = vrot.slane %v633_v21, 1  ;;  %v656_v27 = vrot.slane %v634_v31, 1  ;;  %v657_v47 = vrot.slane %v635_v24, 1  ;;  %v658_v48 = vrot.slane %v636_v4, 1 }
  0x5e   : > { %v625_v57 = vadd.f32 %v613_v62, %v593_v23  ;;  %v626_v61 = vadd.f32 %v614_v30, %v594_v15  ;;  %v677_v25 = vrot.slane %v641_v29, 1  ;;  %v678_v11 = vrot.slane %v642_v58, 1 }
  0x5f   : > { %v665_v19 = vadd.f32 %v653_v18, %v615_v16  ;;  %v666_v28 = vadd.f32 %v654_v32, %v616_v63  ;;  %v667_v12 = vadd.f32 %v655_v14, %v617_v0  ;;  %v668_v33 = vadd.f32 %v656_v27, %v618_v36 }
  0x60   : > { %v669_v40 = vadd.f32 %v657_v47, %v619_v41  ;;  %v670_v26 = vadd.f32 %v658_v48, %v620_v49  ;;  %v679_v54 = vrot.slane %v643_v17, 1  ;;  %v680_v42 = vrot.slane %v644_v5, 1 }
  0x61   : > { %v681_v10 = vrot.slane %v645_v22, 1  ;;  %v682_v38 = vrot.slane %v646_v13, 1  ;;  %v699_v9 = vmul.f32 %v2074_v39, %v2250_v37  ;;  %v700_v35 = vmul.f32 %v2074_v39, %v2253_v43 }
  0x62   : > { %v689_v55 = vadd.f32 %v677_v25, %v621_v50  ;;  %v690_v7 = vadd.f32 %v678_v11, %v622_v51  ;;  %v691_v23 = vadd.f32 %v679_v54, %v623_v1  ;;  %v692_v15 = vadd.f32 %v680_v42, %v624_v34 }
  0x63   : > { %v701_v62 = vmul.f32 %v2074_v39, %v2256_v52  ;;  %v702_v30 = vmul.f32 %v2074_v39, %v2259_v20  ;;  %v703_v16 = vmul.f32 %v2074_v39, %v2262_v8  ;;  %v704_v63 = vmul.f32 %v2074_v39, %v2264_v3 }
  0x64   : > { %v709_v0 = vmul.f32 %v2086_v44, %v2250_v37  ;;  %v710_v36 = vmul.f32 %v2086_v44, %v2253_v43  ;;  %v711_v41 = vmul.f32 %v2086_v44, %v2256_v52  ;;  %v712_v49 = vmul.f32 %v2086_v44, %v2259_v20 }
  0x65   : > { %v713_v50 = vmul.f32 %v2086_v44, %v2262_v8  ;;  %v714_v51 = vmul.f32 %v2086_v44, %v2264_v3  ;;  %v721_v1 = vrot.slane %v699_v9, 2  ;;  %v722_v39 = vrot.slane %v700_v35, 2 }
  0x66   : > { %v723_v34 = vrot.slane %v701_v62, 2  ;;  %v724_v6 = vrot.slane %v702_v30, 2  ;;  %v725_v37 = vrot.slane %v703_v16, 2  ;;  %v726_v2 = vrot.slane %v704_v63, 2 }
  0x67   : > { %v693_v21 = vadd.f32 %v681_v10, %v625_v57  ;;  %v694_v31 = vadd.f32 %v682_v38, %v626_v61  ;;  %v745_v24 = vrot.slane %v709_v0, 2  ;;  %v746_v4 = vrot.slane %v710_v36, 2 }
  0x68   : > { %v733_v29 = vadd.f32 %v721_v1, %v665_v19  ;;  %v734_v58 = vadd.f32 %v722_v39, %v666_v28  ;;  %v735_v17 = vadd.f32 %v723_v34, %v667_v12  ;;  %v736_v5 = vadd.f32 %v724_v6, %v668_v33 }
  0x69   : > { %v737_v22 = vadd.f32 %v725_v37, %v669_v40  ;;  %v738_v13 = vadd.f32 %v726_v2, %v670_v26  ;;  %v747_v18 = vrot.slane %v711_v41, 2  ;;  %v748_v32 = vrot.slane %v712_v49, 2 }
  0x6a   : > { %v749_v14 = vrot.slane %v713_v50, 2  ;;  %v750_v44 = vrot.slane %v714_v51, 2  ;;  %v757_v27 = vadd.f32 %v745_v24, %v689_v55  ;;  %v758_v47 = vadd.f32 %v746_v4, %v690_v7 }
  0x6b   : > { %v759_v48 = vadd.f32 %v747_v18, %v691_v23  ;;  %v760_v25 = vadd.f32 %v748_v32, %v692_v15  ;;  %v767_v57 = vmul.f32 %v2089_v45, %v2253_v43  ;;  %v768_v61 = vmul.f32 %v2089_v45, %v2256_v52 }
  0x6c   : > { %v769_v11 = vmul.f32 %v2089_v45, %v2259_v20  ;;  %v770_v19 = vmul.f32 %v2089_v45, %v2262_v8  ;;  %v771_v28 = vmul.f32 %v2089_v45, %v2264_v3  ;;  %v772_v12 = vmul.f32 %v2089_v45, %v2266_v56 }
  0x6d   : > { %v777_v33 = vmul.f32 %v2093_v46, %v2253_v43  ;;  %v778_v40 = vmul.f32 %v2093_v46, %v2256_v52  ;;  %v779_v26 = vmul.f32 %v2093_v46, %v2259_v20  ;;  %v780_v54 = vmul.f32 %v2093_v46, %v2262_v8 }
  0x6e   : > { %v761_v42 = vadd.f32 %v749_v14, %v693_v21  ;;  %v762_v10 = vadd.f32 %v750_v44, %v694_v31  ;;  %v781_v38 = vmul.f32 %v2093_v46, %v2264_v3  ;;  %v782_v45 = vmul.f32 %v2093_v46, %v2266_v56 }
  0x6f   : > { %v783_v9 = vadd.f32 %v767_v57, %v733_v29  ;;  %v784_v35 = vadd.f32 %v768_v61, %v734_v58  ;;  %v785_v55 = vadd.f32 %v769_v11, %v735_v17  ;;  %v786_v7 = vadd.f32 %v770_v19, %v736_v5 }
  0x70   : > { %v787_v23 = vadd.f32 %v771_v28, %v737_v22  ;;  %v788_v15 = vadd.f32 %v772_v12, %v738_v13  ;;  %v789_v62 = vadd.f32 %v777_v33, %v757_v27  ;;  %v790_v30 = vadd.f32 %v778_v40, %v758_v47 }
  0x71   : > { %v791_v16 = vadd.f32 %v779_v26, %v759_v48  ;;  %v792_v63 = vadd.f32 %v780_v54, %v760_v25  ;;  %v799_v0 = vmul.f32 %v2106_v53, %v2253_v43  ;;  %v800_v36 = vmul.f32 %v2106_v53, %v2256_v52  ;;  %v2654_v54 = vld [vmem:[#allocation14_spill] sm:$0xff] }
  0x72   : > { %v801_v41 = vmul.f32 %v2106_v53, %v2259_v20  ;;  %v802_v46 = vmul.f32 %v2106_v53, %v2262_v8  ;;  %v803_v49 = vmul.f32 %v2106_v53, %v2264_v3  ;;  %v804_v50 = vmul.f32 %v2106_v53, %v2266_v56 }
  0x73   : > { %v809_v51 = vmul.f32 %v2119_v59, %v2253_v43  ;;  %v810_v1 = vmul.f32 %v2119_v59, %v2256_v52  ;;  %v811_v39 = vmul.f32 %v2119_v59, %v2259_v20  ;;  %v812_v34 = vmul.f32 %v2119_v59, %v2262_v8 }
  0x74   : > { %v813_v6 = vmul.f32 %v2119_v59, %v2264_v3  ;;  %v814_v37 = vmul.f32 %v2119_v59, %v2266_v56  ;;  %v821_v2 = vrot.slane %v799_v0, 1  ;;  %v822_v53 = vrot.slane %v800_v36, 1 }
  0x75   : > { %v823_v21 = vrot.slane %v801_v41, 1  ;;  %v824_v31 = vrot.slane %v802_v46, 1  ;;  %v825_v24 = vrot.slane %v803_v49, 1  ;;  %v826_v4 = vrot.slane %v804_v50, 1  ;;  %v2655_v50 = vld [vmem:[#allocation7_spill] sm:$0xff] }
  0x76   : > { %v793_v29 = vadd.f32 %v781_v38, %v761_v42  ;;  %v794_v58 = vadd.f32 %v782_v45, %v762_v10  ;;  %v845_v17 = vrot.slane %v809_v51, 1  ;;  %v846_v5 = vrot.slane %v810_v1, 1  ;;  %v2656_v51 = vld [vmem:[#allocation13_spill] sm:$0xff] }
  0x77   : > { %v833_v22 = vadd.f32 %v821_v2, %v783_v9  ;;  %v834_v13 = vadd.f32 %v822_v53, %v784_v35  ;;  %v835_v18 = vadd.f32 %v823_v21, %v785_v55  ;;  %v836_v32 = vadd.f32 %v824_v31, %v786_v7 }
  0x78   : > { %v837_v14 = vadd.f32 %v825_v24, %v787_v23  ;;  %v838_v44 = vadd.f32 %v826_v4, %v788_v15  ;;  %v847_v27 = vrot.slane %v811_v39, 1  ;;  %v848_v47 = vrot.slane %v812_v34, 1  ;;  %v2657_v39 = vld [vmem:[#allocation8_spill] sm:$0xff] }
  0x79   : > { %v849_v48 = vrot.slane %v813_v6, 1  ;;  %v850_v59 = vrot.slane %v814_v37, 1  ;;  %v867_v25 = vmul.f32 %v2242_v60, %v2253_v43  ;;  %v868_v57 = vmul.f32 %v2242_v60, %v2256_v52 }
  0x7a   : > { %v857_v61 = vadd.f32 %v845_v17, %v789_v62  ;;  %v858_v11 = vadd.f32 %v846_v5, %v790_v30  ;;  %v859_v19 = vadd.f32 %v847_v27, %v791_v16  ;;  %v860_v28 = vadd.f32 %v848_v47, %v792_v63 }
  0x7b   : > { %v869_v12 = vmul.f32 %v2242_v60, %v2259_v20  ;;  %v870_v33 = vmul.f32 %v2242_v60, %v2262_v8  ;;  %v871_v40 = vmul.f32 %v2242_v60, %v2264_v3  ;;  %v872_v26 = vmul.f32 %v2242_v60, %v2266_v56 }
  0x7c   : > { %v877_v42 = vmul.f32 %v2654_v54, %v2253_v43  ;;  %v878_v10 = vmul.f32 %v2654_v54, %v2256_v52  ;;  %v879_v38 = vmul.f32 %v2654_v54, %v2259_v20  ;;  %v880_v45 = vmul.f32 %v2654_v54, %v2262_v8 }
  0x7d   : > { %v881_v9 = vmul.f32 %v2654_v54, %v2264_v3  ;;  %v882_v35 = vmul.f32 %v2654_v54, %v2266_v56  ;;  %v889_v55 = vrot.slane %v867_v25, 2  ;;  %v890_v60 = vrot.slane %v868_v57, 2 }
  0x7e   : > { %v891_v7 = vrot.slane %v869_v12, 2  ;;  %v892_v23 = vrot.slane %v870_v33, 2  ;;  %v893_v43 = vrot.slane %v871_v40, 2  ;;  %v894_v15 = vrot.slane %v872_v26, 2 }
  0x7f   : > { %v861_v62 = vadd.f32 %v849_v48, %v793_v29  ;;  %v901_v52 = vadd.f32 %v889_v55, %v833_v22  ;;  %v913_v30 = vrot.slane %v877_v42, 2  ;;  %v914_v16 = vrot.slane %v878_v10, 2  ;;  %v2658_v22 = vld [vmem:[#allocation9_spill] sm:$0xff] }
  0x80   : > { %v902_v20 = vadd.f32 %v890_v60, %v834_v13  ;;  %v903_v63 = vadd.f32 %v891_v7, %v835_v18  ;;  %v904_v0 = vadd.f32 %v892_v23, %v836_v32  ;;  %v905_v8 = vadd.f32 %v893_v43, %v837_v14  ;;  %v2659_v14 = vld [vmem:[#allocation10_spill] sm:$0xff]  ;;  %v2661_v60 = vld [vmem:[#allocation12_spill] sm:$0xff] }
  0x81   : > { %v906_v36 = vadd.f32 %v894_v15, %v838_v44  ;;  %v915_v41 = vrot.slane %v879_v38, 2  ;;  %v916_v3 = vrot.slane %v880_v45, 2  ;;  %v917_v46 = vrot.slane %v881_v9, 2  ;;  %v2660_v38 = vld [vmem:[#allocation11_spill] sm:$0xff] }
  0x82   : > { %v862_v49 = vadd.f32 %v850_v59, %v794_v58  ;;  %v918_v56 = vrot.slane %v882_v35, 2  ;;  %v934_v1 = vrot.slane %v2656_v51, %v2655_v50  ;;  %v944_v34 = vrot.slane %v2656_v51, %v2657_v39 }
  0x83   : > { %v925_v6 = vadd.f32 %v913_v30, %v857_v61  ;;  %v926_v37 = vadd.f32 %v914_v16, %v858_v11  ;;  %v927_v2 = vadd.f32 %v915_v41, %v859_v19  ;;  %v928_v53 = vadd.f32 %v916_v3, %v860_v28 }
  0x84   : > { %v935_v21 = vmul.f32 %v934_v1, %v901_v52  ;;  %v936_v31 = vmul.f32 %v934_v1, %v902_v20  ;;  %v937_v24 = vmul.f32 %v934_v1, %v903_v63  ;;  %v938_v4 = vmul.f32 %v934_v1, %v904_v0  ;;  %v2499_v52 = vld [vmem:[%s2617_s1 + $0x18] sm:$0x3f] }
  0x85   : > { %v929_v29 = vadd.f32 %v917_v46, %v861_v62  ;;  %v939_v17 = vmul.f32 %v934_v1, %v905_v8  ;;  %v940_v5 = vmul.f32 %v934_v1, %v906_v36  ;;  %v960_v58 = vrot.slane %v2656_v51, %v2658_v22 }
  0x86   : > { %v930_v13 = vadd.f32 %v918_v56, %v862_v49  ;;  %v945_v18 = vadd.f32 %v944_v34, %v935_v21  ;;  %v946_v32 = vadd.f32 %v944_v34, %v936_v31  ;;  %v970_v44 = vrot.slane %v2656_v51, %v2659_v14 }
  0x87   : > { %v947_v27 = vadd.f32 %v944_v34, %v937_v24  ;;  %v961_v47 = vmul.f32 %v960_v58, %v925_v6  ;;  %v962_v48 = vmul.f32 %v960_v58, %v926_v37  ;;  %v948_v59 = vadd.f32 %v944_v34, %v938_v4  ;;  %v2663_v37 = vld [vmem:[#allocation6_spill] sm:$0xff] }
  0x88   : > { %v949_v25 = vadd.f32 %v944_v34, %v939_v17  ;;  %v950_v57 = vadd.f32 %v944_v34, %v940_v5  ;;  %v951_v61 = vmax.f32 %v945_v18, 0.0  ;;  %v952_v11 = vmax.f32 %v946_v32, 0.0  ;;  %v2662_v34 = vld [vmem:[#allocation5_spill] sm:$0xff] }
  0x89   : > { %v963_v19 = vmul.f32 %v960_v58, %v927_v2  ;;  %v964_v28 = vmul.f32 %v960_v58, %v928_v53  ;;  %v965_v12 = vmul.f32 %v960_v58, %v929_v29  ;;  %v966_v33 = vmul.f32 %v960_v58, %v930_v13 }
  0x8a   : > { %v971_v40 = vadd.f32 %v970_v44, %v961_v47  ;;  %v972_v26 = vadd.f32 %v970_v44, %v962_v48  ;;  %v953_v54 = vmax.f32 %v947_v27, 0.0  ;;  %v986_v45 = vrot.slane %v2656_v51, %v2660_v38 }
  0x8b   : > { %v973_v42 = vadd.f32 %v970_v44, %v963_v19  ;;  %v974_v10 = vadd.f32 %v970_v44, %v964_v28  ;;  %v954_v9 = vmax.f32 %v948_v59, 0.0  ;;  %v975_v35 = vadd.f32 %v970_v44, %v965_v12 }
  0x8c   : > { %v976_v55 = vadd.f32 %v970_v44, %v966_v33  ;;  %v996_v7 = vrot.slane %v2656_v51, %v2661_v60  ;;  %v955_v23 = vmax.f32 %v949_v25, 0.0  ;;  %v956_v43 = vmax.f32 %v950_v57, 0.0 }
  0x8d   : > { %v977_v15 = vmax.f32 %v971_v40, 0.0  ;;  %v978_v62 = vmax.f32 %v972_v26, 0.0  ;;  %v979_v30 = vmax.f32 %v973_v42, 0.0  ;;  %v980_v16 = vmax.f32 %v974_v10, 0.0 }
  0x8e   : > { %v987_v20 = vmul.f32 %v986_v45, %v951_v61  ;;  %v988_v63 = vmul.f32 %v986_v45, %v952_v11  ;;  %v981_v0 = vmax.f32 %v975_v35, 0.0  ;;  %v982_v8 = vmax.f32 %v976_v55, 0.0 }
  0x8f   : > { %v989_v36 = vmul.f32 %v986_v45, %v953_v54  ;;  %v990_v41 = vmul.f32 %v986_v45, %v954_v9  ;;  %v991_v3 = vmul.f32 %v986_v45, %v955_v23  ;;  %v992_v46 = vmul.f32 %v986_v45, %v956_v43 }
  0x90   : > { %v997_v49 = vmul.f32 %v996_v7, %v977_v15  ;;  %v998_v56 = vmul.f32 %v996_v7, %v978_v62  ;;  %v999_v51 = vmul.f32 %v996_v7, %v979_v30  ;;  %v1000_v1 = vmul.f32 %v996_v7, %v980_v16 }
  0x91   : > { %v1012_v6 = vrot.slane %v2499_v52, %v2662_v34  ;;  %v1022_v2 = vrot.slane %v2499_v52, %v2663_v37  ;;  %v1001_v53 = vmul.f32 %v996_v7, %v981_v0  ;;  %v1002_v21 = vmul.f32 %v996_v7, %v982_v8 }
  0x92   : > { %v1064_v31 = vrot.slane %v2499_v52, %v2658_v22  ;;  %v1074_v24 = vrot.slane %v2499_v52, %v2659_v14  ;;  %v1003_v57 = vadd.f32 %v997_v49, %v987_v20  ;;  %v1004_v22 = vadd.f32 %v998_v56, %v988_v63 }
  0x93   : > { %v1013_v4 = vmul.f32 %v1012_v6, %v951_v61  ;;  %v1014_v29 = vmul.f32 %v1012_v6, %v952_v11  ;;  %v1015_v17 = vmul.f32 %v1012_v6, %v953_v54  ;;  %v1016_v5 = vmul.f32 %v1012_v6, %v954_v9 }
  0x94   : > { %v1017_v58 = vmul.f32 %v1012_v6, %v955_v23  ;;  %v1018_v13 = vmul.f32 %v1012_v6, %v956_v43  ;;  %v1023_v18 = vmul.f32 %v1022_v2, %v977_v15  ;;  %v1024_v32 = vmul.f32 %v1022_v2, %v978_v62 }
  0x95   : > { %v1025_v44 = vmul.f32 %v1022_v2, %v979_v30  ;;  %v1026_v27 = vmul.f32 %v1022_v2, %v980_v16  ;;  %v1027_v47 = vmul.f32 %v1022_v2, %v981_v0  ;;  %v1028_v48 = vmul.f32 %v1022_v2, %v982_v8 }
  0x96   : > { %v1029_v59 = vadd.f32 %v1023_v18, %v1013_v4  ;;  %v1030_v25 = vadd.f32 %v1024_v32, %v1014_v29  ;;  %v1005_v33 = vadd.f32 %v999_v51, %v989_v36  ;;  %v1006_v40 = vadd.f32 %v1000_v1, %v990_v41 }
  0x97   : > { %v1031_v19 = vadd.f32 %v1025_v44, %v1015_v17  ;;  %v1032_v28 = vadd.f32 %v1026_v27, %v1016_v5  ;;  %v1033_v14 = vadd.f32 %v1027_v47, %v1017_v58  ;;  %v1034_v61 = vadd.f32 %v1028_v48, %v1018_v13 }
  0x98   : > { %v1065_v11 = vmul.f32 %v1064_v31, %v1029_v59  ;;  %v1066_v12 = vmul.f32 %v1064_v31, %v1030_v25  ;;  %v1007_v9 = vadd.f32 %v1001_v53, %v991_v3  ;;  %v1038_v35 = vrot.slane %v2499_v52, %v2655_v50 }
  0x99   : > { %v1067_v26 = vmul.f32 %v1064_v31, %v1031_v19  ;;  %v1068_v54 = vmul.f32 %v1064_v31, %v1032_v28  ;;  %v1069_v42 = vmul.f32 %v1064_v31, %v1033_v14  ;;  %v1070_v10 = vmul.f32 %v1064_v31, %v1034_v61 }
  0x9a   : > { %v1075_v38 = vadd.f32 %v1074_v24, %v1065_v11  ;;  %v1076_v45 = vadd.f32 %v1074_v24, %v1066_v12  ;;  %v1008_v62 = vadd.f32 %v1002_v21, %v992_v46  ;;  %v1039_v30 = vmul.f32 %v1038_v35, %v1003_v57 }
  0x9b   : > { %v1077_v55 = vadd.f32 %v1074_v24, %v1067_v26  ;;  %v1078_v60 = vadd.f32 %v1074_v24, %v1068_v54  ;;  %v1079_v7 = vadd.f32 %v1074_v24, %v1069_v42  ;;  %v1080_v23 = vadd.f32 %v1074_v24, %v1070_v10  ;;  %v1126_v10 = vld [vmem:[%s2618_s2] sm:$0xff] }
  0x9c   : > { %v1081_v43 = vmax.f32 %v1075_v38, 0.0  ;;  %v1082_v15 = vmax.f32 %v1076_v45, 0.0  ;;  %v1040_v0 = vmul.f32 %v1038_v35, %v1004_v22  ;;  %v1041_v41 = vmul.f32 %v1038_v35, %v1005_v33  ;;  %v1127_v38 = vld [vmem:[%s2618_s2 + $0x8] sm:$0xff] }
  0x9d   : > { %v1083_v16 = vmax.f32 %v1077_v55, 0.0  ;;  %v1084_v20 = vmax.f32 %v1078_v60, 0.0  ;;  %v1085_v63 = vmax.f32 %v1079_v7, 0.0  ;;  %v1042_v3 = vmul.f32 %v1038_v35, %v1006_v40 }
  0x9e   : > { %v1107_v8 = vsel %vm1087_vm3, %v1081_v43, 0.0  ;;  %v1108_v36 = vsel %vm1087_vm3, %v1082_v15, 0.0  ;;  %v1086_v49 = vmax.f32 %v1080_v23, 0.0  ;;  %v1043_v1 = vmul.f32 %v1038_v35, %v1007_v9 }
  0x9f   : > { %v1109_v50 = vadd.f32 %v1108_v36, %v1107_v8  ;;  %v1110_v56 = vsel %vm1087_vm3, %v1083_v16, 0.0  ;;  %v1112_v51 = vsel %vm1087_vm3, %v1084_v20, 0.0  ;;  %v1044_v34 = vmul.f32 %v1038_v35, %v1008_v62  ;;  %v1279_v20 = vld [vmem:[%s2619_s3] sm:$0xf]  ;;  %v1681_v36 = vld [vmem:[%s2619_s3 + $0x4] sm:$0xf] }
  0xa0   : > { %v1048_v46 = vrot.slane %v2499_v52, %v2657_v39  ;;  %v1114_v37 = vsel %vm1087_vm3, %v1085_v63, 0.0  ;;  %v1116_v4 = vsel %vm1087_vm3, %v1086_v49, 0.0  ;;  %v1750_v55 = vpack.c.bf16 %v1127_v38, %v1126_v10  ;;  %1723 = vmatpush3.msk.msra.mxu1 %vm1284_vm5, %v1279_v20  ;;  %v1685_v49 = vld [vmem:[%s2620_s4 + $0x10] sm:$0xff] }
  0xa1   : > { %v1111_v6 = vadd.f32 %v1110_v56, %v1109_v50  ;;  %v2664_v43 = vmov 0.0   ;;  %v2665_v62 = vmov 0.0|0.0   ;;  %v1686_v56 = vld [vmem:[%s2620_s4 + $0x18] sm:$0xff] }
  0xa2   : > { %v1049_v2 = vadd.f32 %v1048_v46, %v1039_v30  ;;  %v1050_v53 = vadd.f32 %v1048_v46, %v1040_v0  ;;  %v1051_v21 = vadd.f32 %v1048_v46, %v1041_v41  ;;  %v1052_v31 = vadd.f32 %v1048_v46, %v1042_v3  ;;  %1727 = vmatprep.subr.mxu1 %v2664_v43  ;;  %v1447_v41 = vld [vmem:[%s2620_s4] sm:$0xff]  ;;  %v1448_v3 = vld [vmem:[%s2620_s4 + $0x8] sm:$0xff] }
  0xa3   : > { %v1113_v24 = vadd.f32 %v1112_v51, %v1111_v6  ;;  %v1053_v29 = vadd.f32 %v1048_v46, %v1043_v1  ;;  %v1054_v17 = vadd.f32 %v1048_v46, %v1044_v34  ;;  %v1756_v50 = vpack.c.bf16 %v1448_v3, %v1447_v41 }
  0xa4   : > { %v1055_v5 = vmax.f32 %v1049_v2, 0.0  ;;  %v1056_v58 = vmax.f32 %v1050_v53, 0.0  ;;  %v1057_v13 = vmax.f32 %v1051_v21, 0.0  ;;  %v1058_v18 = vmax.f32 %v1052_v31, 0.0 }
  0xa5   : > { %v1115_v32 = vadd.f32 %v1114_v37, %v1113_v24  ;;  %v1059_v44 = vmax.f32 %v1053_v29, 0.0  ;;  %v1060_v59 = vmax.f32 %v1054_v17, 0.0  ;;  %v1753_v51 = vpack.c.bf16 %v1686_v56, %v1685_v49 }
  0xa6   : > { %v1088_v39 = vsel %vm1087_vm3, %v1055_v5, 0.0  ;;  %v1089_v52 = vsel %vm1087_vm3, %v1056_v58, 0.0  ;;  %v1091_v27 = vsel %vm1087_vm3, %v1057_v13, 0.0  ;;  %v1093_v25 = vsel %vm1087_vm3, %v1058_v18, 0.0 }
  0xa7   : > { %v1117_v47 = vadd.f32 %v1116_v4, %v1115_v32  ;;  %v1090_v48 = vadd.f32 %v1089_v52, %v1088_v39  ;;  %v1095_v28 = vsel %vm1087_vm3, %v1059_v44, 0.0  ;;  %v1097_v11 = vsel %vm1087_vm3, %v1060_v59, 0.0  ;;  %v1598_v32 = vld [vmem:[%s2621_s5] sm:$0x1] }
  0xa9   : > { %v1118_v57 = vsel %vm1087_vm3, %v1117_v47, 0.0  ;;  %v1092_v22 = vadd.f32 %v1091_v27, %v1090_v48 }
  0xaa   : > { %v1119_v19 = vrot.slane %v1118_v57, 4 }
  0xab   : > { %v1094_v14 = vadd.f32 %v1093_v25, %v1092_v22 }
  0xac   : > { %v1120_v61 = vadd.f32 %v1119_v19, %v1118_v57 }
  0xad   : > { %v1096_v12 = vadd.f32 %v1095_v28, %v1094_v14 }
  0xae   : > { %v1121_v33 = vrot.slane %v1120_v61, 2 }
  0xaf   : > { %v1098_v40 = vadd.f32 %v1097_v11, %v1096_v12 }
  0xb0   : > { %v1122_v26 = vadd.f32 %v1121_v33, %v1120_v61 }
  0xb1   : > { %v1099_v54 = vsel %vm1087_vm3, %v1098_v40, 0.0 }
  0xb2   : > { %v1123_v42 = vrot.slane %v1122_v26, 1  ;;  %v1100_v45 = vrot.slane %v1099_v54, 4 }
  0xb4   : > { %v1124_v9 = vadd.f32 %v1123_v42, %v1122_v26  ;;  %v1101_v35 = vadd.f32 %v1100_v45, %v1099_v54 }
  0xb6   : > { %v1125_v60 = vmul.f32 0.027777778, %v1124_v9  ;;  %v1102_v7 = vrot.slane %v1101_v35, 2 }
  0xb8   : > { %1713 = vmatmul.mubr.msk.f32.vlgmr.msra.gmra.mrb[0].mxu0 %vm1131_vm4, %v1125_v60  ;;  %v1103_v23 = vadd.f32 %v1102_v7, %v1101_v35 }
  0xb9   : > { %1751 = vmatpush3.bf16.msra.mxu0 %v1750_v55  ;;  %1719 = vmatprep.mubr.msk.f32.mxu0 %vm1876_vm0, %v2664_v43 }
  0xba   : > { %v1104_v15 = vrot.slane %v1103_v23, 1  ;;  %1755 = vmatprep.subr.bf16.mxu0 %v2665_v62 }
  0xbc   : > { %v1105_v30 = vadd.f32 %v1104_v15, %v1103_v23 }
  0xbe   : > { %v1106_v16 = vmul.f32 0.027777778, %v1105_v30 }
  0xc0   : > { %1720 = vmatmul.mubr.msk.f32.vlgmr.msra.gmra.mrb[0].mxu0 %vm1131_vm4, %v1106_v16 }
  0xc1   : > { %1743 = vmatprep.mubr.msk.f32.mxu0 %vm1876_vm0, %v2664_v43  ;;  %1757 = vmatpush3.bf16.msra.mxu0 %v1756_v50 }
 0x193   : > { %v1274_v63 = vpop.f32.mrb[0].mxu0 }
 0x194   : > { %v1278_v0 = vmax.f32 %v1274_v63, 0.0  ;;  %v1721_v8 = vpop.f32.mrb[1].mxu0 }
 0x196   : > { %1725 = vmatmul.mubr.msk.f32.vlgmr.msra.gmra.mrb[0].mxu1 %vm1280_vm6, %v1278_v0 }
 0x197   : > { %1728 = vmatpush3.msk.msra.mxu1 %vm1284_vm5, %v1681_v36  ;;  %1729 = vmatprep.mubr.msk.f32.mxu1 %vm1876_vm0, %v2664_v43 }
 0x198   : > { %1752 = vmatprep.subr.bf16.mxu1 %v2665_v62 }
 0x19a   : > { %1730 = vmatmul.mubr.msk.f32.vlgmr.msra.gmra.mrb[2].mxu1 %vm1280_vm6, %v1278_v0 }
 0x19b   : > { %1736 = vmatprep.mubr.msk.f32.mxu1 %vm1876_vm0, %v2664_v43  ;;  %1754 = vmatpush3.bf16.msra.mxu1 %v1753_v51 }
 0x269   : > { %v1354_v1 = vpop.f32.mrb[0].mxu1 }
 0x26a   : > { %v1680_v34 = vmul.f32 -1.442695, %v1354_v1  ;;  %v1726_v46 = vpop.f32.mrb[1].mxu1 }
 0x26c   : > { %1803 = vpow2.f32 %v1680_v34 }
 0x26d   : > { %v1435_v6 = vpop.f32.mrb[2].mxu1 }
 0x26e   : > { %v1684_v37 = vmul.f32 -1.442695, %v1435_v6  ;;  %v1731_v2 = vpop.f32.mrb[3].mxu1 }
 0x270   : > { %1805 = vpow2.f32 %v1684_v37 }
 0x276   : > { %v1804_v53 = vpop.eup %1803 }
 0x277   : > { %v1361_v21 = vadd.f32 1.0, %v1804_v53 }
 0x279   : > { %1807 = vrcp.f32 %v1361_v21 }
 0x27a   : > { %v1806_v31 = vpop.eup %1805 }
 0x27b   : > { %v1442_v24 = vadd.f32 1.0, %v1806_v31 }
 0x27d   : > { %1809 = vrcp.f32 %v1442_v24 }
 0x283   : > { %v1808_v4 = vpop.eup %1807 }
 0x284   : > { %v1445_v29 = vmul.f32 %v1808_v4, %v1106_v16 }
 0x286   : > { %1744 = vmatmul.mubr.msk.f32.vlgmr.msra.gmra.mrb[2].mxu0 %vm1131_vm4, %v1445_v29 }
 0x287   : > { %v1810_v17 = vpop.eup %1809 }
 0x288   : > { %v1446_v5 = vmul.f32 %v1810_v17, %v1125_v60 }
 0x28a   : > { %1737 = vmatmul.mubr.msk.f32.vlgmr.msra.gmra.mrb[4].mxu1 %vm1131_vm4, %v1446_v5 }
 0x359   : > { %v1594_v58 = vpop.f32.mrb[2].mxu0 }
 0x35a   : > { %v1745_v13 = vpop.f32.mrb[3].mxu0 }
 0x35d   : > { %v1521_v18 = vpop.f32.mrb[4].mxu1 }
 0x35e   : > { %v1595_v44 = vadd.f32 %v1594_v58, %v1521_v18  ;;  %v1738_v39 = vpop.f32.mrb[5].mxu1 }
 0x360   : > { %v1599_v52 = vadd.f32 %v1598_v32, %v1595_v44 }
 0x362   : > { %1600 = vst [vmem:[%s243_s16] sm:$0x1] %v1599_v52 }
 0x363   : > { %1824 = shalt.err (!%p1821_p3)
}
 0x364   : > { %s1825_s10 = scalar_lea.hbm %s2574_s20, 16  ;;  %s1829_s13 = scalar_lea.hbm %s2622_s6, 32 }
 0x365   : > { %p1826_p4 = scmp.ne.s32.totalorder %s2574_s20, %s1825_s10  ;;  %p1830_p9 = scmp.lt.u32.totalorder %s2574_s20, %s2622_s6 }
 0x366   : > { %p1831_p10 = scmp.lt.u32.totalorder %s1829_s13, %s1825_s10  ;;  %p1833_p12 = scmp.lt.u32.totalorder %s1825_s10, %s2574_s20 }
 0x367   : > { %p1827_p7 = pnand %p1826_p4, %p1952_p5 }
 0x368   : > { %p1832_p11 = por %p1831_p10, %p1830_p9 }
 0x369   : > { %p1828_p8 = pneg %p1827_p7 }
 0x36a   : > { %p1834_p13 = por %p1833_p12, %p1832_p11 }
 0x36c   : > { %p1835_p0 = pnand %p1834_p13, %p1828_p8 }
 0x36e   : > { %1838 = shalt.err (!%p1835_p0)
}
 0x36f   : > { %1761 = dma.vmem_to_hbm [thread:$0]  (%p1952_p5), %s2576_s17, 16, %s2574_s20, %s1602_s26  }
 0x370 PF: > { %p1767_p1 = scmp.ge.s32.totalorder %s1873_s24, 2  ;;  %s1626_s16 = sand.u32 1, %s1861_s21  }
 0x371   : > { %s1627_s18 = scalar_lea.sflag [#allocation3], %s1626_s16 }
 0x372   : > { %p1764_p2 = pnand %p1767_p1, %p1956_p6 }
 0x374   : > { %1856 = dma.done.wait (!%p1764_p2), %s1627_s18, 16  }
 0x375   : > { %1858 = vsyncadd (!%p1764_p2), %s1627_s18, 4294967280  ;;  %p16_p3 = scmp.ge.s32.totalorder %s1939_s27, 4   ;;  %s2666_s21 = smov %s1865_s22 }
 0x376   : > { %s2667_s22 = smov %s1869_s23  ;;  %s2668_s23 = smov %s1950_s30 }
 0x377   : > { %s2669_s24 = smov %s1939_s27  ;;  %18 = sbr.rel (!%p16_p3) target bundleno = 3 (0x3), region = 82 }
 0x37e   :  { %1631 = vsyncpa [#allocation3], 1 }
 0x37f   :  { %1633 = vsyncpa [#allocation3 + $0x1], 1 }

</bundles_post_ra>
